<compile_context>
chip_gen: v7x
topology: tpu7x:2x2x1
jax: 0.10.0
libtpu: 0.0.40
codegen_flags: <defaults>
</compile_context>

<pallas_src>
import math

import jax
import jax.numpy as jnp
from jax.experimental import pallas as pl
from jax.experimental.pallas import tpu as pltpu

# ---------------- small synthetic ViT config (mirrors Phikon/ViT structure) ----
B = 2          # batch
C = 3          # image channels
IMG = 32       # image height/width
P = 16         # patch size
NP = (IMG // P) ** 2      # number of patches = 4
S = NP + 1                # sequence length incl. CLS token = 5
CPP = C * P * P           # flattened patch size = 768
D = 32         # hidden size
H = 2          # attention heads
DH = D // H    # head dim = 16
M = 64         # MLP intermediate size
LAYERS = 2
EPS = 1e-12    # HF ViT layer_norm_eps


# ----------------------------- fused Pallas kernel -----------------------------
def _ln(x, g, b):
    mu = jnp.mean(x, axis=-1, keepdims=True)
    var = jnp.mean((x - mu) ** 2, axis=-1, keepdims=True)
    return (x - mu) * jax.lax.rsqrt(var + EPS) * g + b


def phikon_fused_kernel(patches_ref, w_patch_ref, seq_bias_ref, head_mask_ref,
                        batch_mask_ref, cls_sel_ref,
                        ln1g_ref, ln1b_ref, wqkv_ref, bqkv_ref,
                        wo_ref, bo_ref, ln2g_ref, ln2b_ref,
                        w1_ref, b1_ref, w2_ref, b2_ref,
                        lnfg_ref, lnfb_ref,
                        o_ref):
    # Patch embed + CLS + pos for ALL batch elements in one (T, CPP)@(CPP, D)
    # matmul.  Rows b*S of `patches` are zero ("CLS patch"), so those rows pick
    # up the CLS token + pos purely from seq_bias.                 -> (T, D)
    h = (jnp.dot(patches_ref[...], w_patch_ref[...],
                 preferred_element_type=jnp.float32)
         + seq_bias_ref[...])

    batch_mask = batch_mask_ref[...]            # (T, T): 0 in-image, -1e30 cross

    for l in range(LAYERS):                     # static unroll (LAYERS small)
        # ---- attention block (pre-LN) ----
        hn = _ln(h, ln1g_ref[l], ln1b_ref[l])
        hn16 = hn.astype(jnp.bfloat16)
        # Single fused QKV matmul across heads: (T, D) @ (D, 3D).  The Q
        # columns of wqkv/bqkv already carry the 1/sqrt(DH) softmax scale.
        qkv = (jnp.dot(hn16, wqkv_ref[l], preferred_element_type=jnp.float32)
               + bqkv_ref[l])
        q = qkv[:, 0 * D:1 * D]                 # static lane slices (XLU rolls)
        k = qkv[:, 1 * D:2 * D]
        v = qkv[:, 2 * D:3 * D]

        # Per-head attention via lane masks (no lane slicing of activations):
        #   scores_h = (q * mask_h) @ k^T + batch_mask
        #   ctx     += softmax(scores_h) @ (v * mask_h)  -> disjoint columns
        ctx = jnp.zeros_like(q)
        for hd in range(H):                     # static unroll, H small
            mask = head_mask_ref[hd]            # (1, D) one-hot over head lanes
            s = jax.lax.dot_general(q * mask, k, (((1,), (1,)), ((), ())),
                                    preferred_element_type=jnp.float32)
            s = s + batch_mask                  # block-diagonal over images
            s = s - jnp.max(s, axis=-1, keepdims=True)
            p = jnp.exp(s)
            p = p * pl.reciprocal(jnp.sum(p, axis=-1, keepdims=True), approx=True)
            ctx = ctx + jnp.dot(p, v * mask, preferred_element_type=jnp.float32)

        # single (D, D) output projection over the concatenated heads
        attn = jnp.dot(ctx.astype(jnp.bfloat16), wo_ref[l],
                       preferred_element_type=jnp.float32) + bo_ref[l]
        h = h + attn                            # residual 1

        # ---- MLP block (pre-LN) ----
        hn2 = _ln(h, ln2g_ref[l], ln2b_ref[l])
        m = jnp.dot(hn2.astype(jnp.bfloat16), w1_ref[l],
                    preferred_element_type=jnp.float32) + b1_ref[l]
        # TODO(synk): HF ViT uses exact erf-GELU; tanh approximation used here.
        m = jax.nn.gelu(m, approximate=True)
        m = jnp.dot(m.astype(jnp.bfloat16), w2_ref[l],
                    preferred_element_type=jnp.float32) + b2_ref[l]
        h = h + m                               # residual 2

    # Gather the CLS row of every image with a one-hot (B, T) matmul (avoids
    # unaligned sublane slicing), apply the final per-token LayerNorm, and
    # emit the whole (B, D) slab with one dense store.
    cls = jnp.dot(cls_sel_ref[...], h, preferred_element_type=jnp.float32)
    o_ref[...] = _ln(cls, lnfg_ref[...], lnfb_ref[...])


# ----------------------------- pallas_call wrapper ------------------------------
def phikon_forward(x, pp):
    # x: (B, C, IMG, IMG) NCHW (matches PyTorch input convention)
    bx = x.shape[0]
    T = bx * S

    # Non-overlapping conv patch-embed == im2col (glue reshape) + in-kernel matmul.
    xp = x.reshape(bx, C, IMG // P, P, IMG // P, P)
    xp = xp.transpose(0, 2, 4, 1, 3, 5).reshape(bx, NP, CPP)
    # Prepend an all-zero "patch" per image for its CLS slot, fold the batch
    # into the token axis, and cast to bf16 in the wrapper (halves the only
    # CPP-scaled DMA; no f32->bf16 pack on the kernel's critical path).
    patches = jnp.concatenate(
        [jnp.zeros((bx, 1, CPP), x.dtype), xp], axis=1
    ).reshape(T, CPP).astype(jnp.bfloat16)

    # Per-token sequence bias replicated over the batch (tiny param-prep op).
    seq_bias = jnp.tile(pp["seq_bias"], (bx, 1))                     # (T, D)

    # Shape-only constants (fold to XLA literals under jit, DMA'd once):
    bid = jnp.arange(T, dtype=jnp.int32) // S
    batch_mask = jnp.where(bid[:, None] == bid[None, :],
                           0.0, -1e30).astype(jnp.float32)           # (T, T)
    cls_sel = (jnp.arange(T, dtype=jnp.int32)[None, :]
               == (jnp.arange(bx, dtype=jnp.int32) * S)[:, None]
               ).astype(jnp.float32)                                  # (B, T)

    inputs = (patches, pp["w_patch"], seq_bias, pp["head_mask"],
              batch_mask, cls_sel,
              pp["ln1_g"], pp["ln1_b"], pp["wqkv"], pp["bqkv"],
              pp["wo"], pp["bo"], pp["ln2_g"], pp["ln2_b"],
              pp["w1"], pp["b1"], pp["w2"], pp["b2"],
              pp["ln_f_g"], pp["ln_f_b"])

    vmem_spec = pl.BlockSpec(memory_space=pltpu.MemorySpace.VMEM)
    out = pl.pallas_call(
        phikon_fused_kernel,
        in_specs=[vmem_spec] * len(inputs),
        out_specs=vmem_spec,
        out_shape=jax.ShapeDtypeStruct((bx, D), jnp.float32),
    )(*inputs)
    return out                                   # (B, D) CLS embedding


# ----------------------------- parameters ---------------------------------------
def init_params(key):
    keys = jax.random.split(key, 3 + 6 * LAYERS)
    it = iter(keys)

    def nrm(shape):
        return 0.02 * jax.random.normal(next(it), shape, jnp.float32)

    params = {
        "w_patch": nrm((CPP, D)),
        "b_patch": jnp.zeros((D,), jnp.float32),
        "cls": nrm((1, D)),
        "pos": nrm((S, D)),
        "ln_f_g": jnp.ones((D,), jnp.float32),
        "ln_f_b": jnp.zeros((D,), jnp.float32),
        "layers": [],
    }
    for _ in range(LAYERS):
        params["layers"].append(dict(
            ln1_g=jnp.ones((D,), jnp.float32), ln1_b=jnp.zeros((D,), jnp.float32),
            wq=nrm((D, D)), bq=jnp.zeros((D,), jnp.float32),
            wk=nrm((D, D)), bk=jnp.zeros((D,), jnp.float32),
            wv=nrm((D, D)), bv=jnp.zeros((D,), jnp.float32),
            wo=nrm((D, D)), bo=jnp.zeros((D,), jnp.float32),
            ln2_g=jnp.ones((D,), jnp.float32), ln2_b=jnp.zeros((D,), jnp.float32),
            w1=nrm((D, M)), b1=jnp.zeros((M,), jnp.float32),
            w2=nrm((M, D)), b2=jnp.zeros((D,), jnp.float32),
        ))
    return params


def pack_params(p):
    """One-time packing for the fused kernel:
       * stack per-layer weights on a leading LAYERS axis,
       * fuse Wq/Wk/Wv (and biases) into one (D, 3D) QKV weight,
       * fold 1/sqrt(DH) into the Q columns,
       * fold CLS token + positional embedding + patch bias into seq_bias,
       * cast matmul weights to bf16 (LN / biases stay f32)."""
    scale = 1.0 / math.sqrt(DH)
    ls = p["layers"]

    def stack_w(name):
        return jnp.stack([L[name] for L in ls]).astype(jnp.bfloat16)

    def stack_v(name):
        return jnp.stack([L[name] for L in ls])[:, None, :]          # (L,1,n) f32

    wqkv = jnp.stack([jnp.concatenate([L["wq"] * scale, L["wk"], L["wv"]], axis=1)
                      for L in ls]).astype(jnp.bfloat16)              # (L, D, 3D)
    bqkv = jnp.stack([jnp.concatenate([L["bq"] * scale, L["bk"], L["bv"]], axis=0)
                      for L in ls])[:, None, :]                       # (L, 1, 3D)

    seq_bias = p["pos"] + jnp.concatenate(
        [p["cls"], jnp.broadcast_to(p["b_patch"][None, :], (NP, D))], axis=0)

    head_mask = (jnp.arange(D)[None, :] // DH
                 == jnp.arange(H)[:, None]).astype(jnp.float32)[:, None, :]

    return {
        "w_patch": p["w_patch"].astype(jnp.bfloat16),
        "seq_bias": seq_bias,                     # (S, D) f32
        "head_mask": head_mask,                   # (H, 1, D) f32
        "ln1_g": stack_v("ln1_g"), "ln1_b": stack_v("ln1_b"),
        "wqkv": wqkv, "bqkv": bqkv,
        "wo": stack_w("wo"), "bo": stack_v("bo"),
        "ln2_g": stack_v("ln2_g"), "ln2_b": stack_v("ln2_b"),
        "w1": stack_w("w1"), "b1": stack_v("b1"),
        "w2": stack_w("w2"), "b2": stack_v("b2"),
        "ln_f_g": p["ln_f_g"][None, :], "ln_f_b": p["ln_f_b"][None, :],
    }


# ----------------------------- main ----------------------------------------------
if __name__ == "__main__":
    key = jax.random.PRNGKey(0)
    pkey, xkey = jax.random.split(key)
    params = pack_params(init_params(pkey))
    x = jax.random.normal(xkey, (B, C, IMG, IMG), jnp.float32)

    fwd = jax.jit(phikon_forward)
    out = jax.block_until_ready(fwd(x, params))

    assert out.shape == (B, D), out.shape
    assert jnp.all(jnp.isfinite(out))
    print("KERNEL_OK")
</pallas_src>

<mosaic_0001>
module attributes {stable_mosaic.version = 11 : i64} {
  func.func @phikon_fused_kernel(%arg0: memref<10x768xbf16, #tpu.memory_space<vmem>>, %arg1: memref<768x32xbf16, #tpu.memory_space<vmem>>, %arg2: memref<10x32xf32, #tpu.memory_space<vmem>>, %arg3: memref<2x1x32xf32, #tpu.memory_space<vmem>>, %arg4: memref<10x10xf32, #tpu.memory_space<vmem>>, %arg5: memref<2x10xf32, #tpu.memory_space<vmem>>, %arg6: memref<2x1x32xf32, #tpu.memory_space<vmem>>, %arg7: memref<2x1x32xf32, #tpu.memory_space<vmem>>, %arg8: memref<2x32x96xbf16, #tpu.memory_space<vmem>>, %arg9: memref<2x1x96xf32, #tpu.memory_space<vmem>>, %arg10: memref<2x32x32xbf16, #tpu.memory_space<vmem>>, %arg11: memref<2x1x32xf32, #tpu.memory_space<vmem>>, %arg12: memref<2x1x32xf32, #tpu.memory_space<vmem>>, %arg13: memref<2x1x32xf32, #tpu.memory_space<vmem>>, %arg14: memref<2x32x64xbf16, #tpu.memory_space<vmem>>, %arg15: memref<2x1x64xf32, #tpu.memory_space<vmem>>, %arg16: memref<2x64x32xbf16, #tpu.memory_space<vmem>>, %arg17: memref<2x1x32xf32, #tpu.memory_space<vmem>>, %arg18: memref<1x32xf32, #tpu.memory_space<vmem>>, %arg19: memref<1x32xf32, #tpu.memory_space<vmem>>, %arg20: memref<2x32xf32, #tpu.memory_space<vmem>>) attributes {dimension_semantics = [], scalar_prefetch = 0 : i64, scratch_operands = 0 : i64, tpu.core_type = #tpu.core_type<tc>} {
    %c0 = arith.constant 0 : index
    %c0_0 = arith.constant 0 : index
    %0 = vector.load %arg0[%c0, %c0_0] : memref<10x768xbf16, #tpu.memory_space<vmem>>, vector<10x768xbf16>
    %c0_1 = arith.constant 0 : index
    %c0_2 = arith.constant 0 : index
    %1 = vector.load %arg1[%c0_1, %c0_2] : memref<768x32xbf16, #tpu.memory_space<vmem>>, vector<768x32xbf16>
    %cst = arith.constant dense<0.000000e+00> : vector<10x32xf32>
    %2 = tpu.matmul %0, %1, %cst {dimension_numbers = #tpu.dot_dimension_numbers<[1], [0], [0], [1], [0, 0, 1, 1], [], []>} : vector<10x768xbf16>, vector<768x32xbf16>, vector<10x32xf32> -> vector<10x32xf32>
    %c0_3 = arith.constant 0 : index
    %c0_4 = arith.constant 0 : index
    %3 = vector.load %arg2[%c0_3, %c0_4] : memref<10x32xf32, #tpu.memory_space<vmem>>, vector<10x32xf32>
    %4 = arith.addf %2, %3 : vector<10x32xf32>
    %c0_5 = arith.constant 0 : index
    %c0_6 = arith.constant 0 : index
    %5 = vector.load %arg4[%c0_5, %c0_6] : memref<10x10xf32, #tpu.memory_space<vmem>>, vector<10x10xf32>
    %c0_7 = arith.constant 0 : index
    %c0_8 = arith.constant 0 : index
    %c0_9 = arith.constant 0 : index
    %6 = vector.load %arg6[%c0_7, %c0_8, %c0_9] : memref<2x1x32xf32, #tpu.memory_space<vmem>>, vector<1x1x32xf32>
    %7 = vector.shape_cast %6 : vector<1x1x32xf32> to vector<1x32xf32>
    %c0_10 = arith.constant 0 : index
    %c0_11 = arith.constant 0 : index
    %c0_12 = arith.constant 0 : index
    %8 = vector.load %arg7[%c0_10, %c0_11, %c0_12] : memref<2x1x32xf32, #tpu.memory_space<vmem>>, vector<1x1x32xf32>
    %9 = vector.shape_cast %8 : vector<1x1x32xf32> to vector<1x32xf32>
    %cst_13 = arith.constant dense<0.000000e+00> : vector<10xf32>
    %10 = vector.multi_reduction <add>, %4, %cst_13 [1] : vector<10x32xf32> to vector<10xf32>
    %11 = vector.shape_cast %10 : vector<10xf32> to vector<10x1xf32>
    %cst_14 = arith.constant 3.200000e+01 : f32
    %12 = vector.broadcast %cst_14 : f32 to vector<10x1xf32>
    %13 = arith.divf %11, %12 : vector<10x1xf32>
    %14 = vector.broadcast %13 : vector<10x1xf32> to vector<10x32xf32>
    %15 = arith.subf %4, %14 : vector<10x32xf32>
    %16 = arith.mulf %15, %15 : vector<10x32xf32>
    %cst_15 = arith.constant dense<0.000000e+00> : vector<10xf32>
    %17 = vector.multi_reduction <add>, %16, %cst_15 [1] : vector<10x32xf32> to vector<10xf32>
    %18 = vector.shape_cast %17 : vector<10xf32> to vector<10x1xf32>
    %cst_16 = arith.constant 3.200000e+01 : f32
    %19 = vector.broadcast %cst_16 : f32 to vector<10x1xf32>
    %20 = arith.divf %18, %19 : vector<10x1xf32>
    %21 = vector.broadcast %13 : vector<10x1xf32> to vector<10x32xf32>
    %22 = arith.subf %4, %21 : vector<10x32xf32>
    %cst_17 = arith.constant 9.99999996E-13 : f32
    %23 = vector.broadcast %cst_17 : f32 to vector<10x1xf32>
    %24 = arith.addf %20, %23 : vector<10x1xf32>
    %25 = math.rsqrt %24 : vector<10x1xf32>
    %26 = vector.broadcast %25 : vector<10x1xf32> to vector<10x32xf32>
    %27 = arith.mulf %22, %26 : vector<10x32xf32>
    %28 = vector.broadcast %7 : vector<1x32xf32> to vector<10x32xf32>
    %29 = arith.mulf %27, %28 : vector<10x32xf32>
    %30 = vector.broadcast %9 : vector<1x32xf32> to vector<10x32xf32>
    %31 = arith.addf %29, %30 : vector<10x32xf32>
    %32 = arith.truncf %31 : vector<10x32xf32> to vector<10x32xbf16>
    %c0_18 = arith.constant 0 : index
    %c0_19 = arith.constant 0 : index
    %c0_20 = arith.constant 0 : index
    %33 = vector.load %arg8[%c0_18, %c0_19, %c0_20] : memref<2x32x96xbf16, #tpu.memory_space<vmem>>, vector<1x32x96xbf16>
    %34 = vector.shape_cast %33 : vector<1x32x96xbf16> to vector<32x96xbf16>
    %cst_21 = arith.constant dense<0.000000e+00> : vector<10x96xf32>
    %35 = tpu.matmul %32, %34, %cst_21 {dimension_numbers = #tpu.dot_dimension_numbers<[1], [0], [0], [1], [0, 0, 1, 1], [], []>} : vector<10x32xbf16>, vector<32x96xbf16>, vector<10x96xf32> -> vector<10x96xf32>
    %c0_22 = arith.constant 0 : index
    %c0_23 = arith.constant 0 : index
    %c0_24 = arith.constant 0 : index
    %36 = vector.load %arg9[%c0_22, %c0_23, %c0_24] : memref<2x1x96xf32, #tpu.memory_space<vmem>>, vector<1x1x96xf32>
    %37 = vector.shape_cast %36 : vector<1x1x96xf32> to vector<1x96xf32>
    %38 = vector.broadcast %37 : vector<1x96xf32> to vector<10x96xf32>
    %39 = arith.addf %35, %38 : vector<10x96xf32>
    %40 = vector.extract_strided_slice %39 {offsets = [0, 0], sizes = [10, 32], strides = [1, 1]} : vector<10x96xf32> to vector<10x32xf32>
    %41 = vector.extract_strided_slice %39 {offsets = [0, 32], sizes = [10, 32], strides = [1, 1]} : vector<10x96xf32> to vector<10x32xf32>
    %42 = vector.extract_strided_slice %39 {offsets = [0, 64], sizes = [10, 32], strides = [1, 1]} : vector<10x96xf32> to vector<10x32xf32>
    %cst_25 = arith.constant 0.000000e+00 : f32
    %43 = vector.broadcast %cst_25 : f32 to vector<10x32xf32>
    %c0_26 = arith.constant 0 : index
    %c0_27 = arith.constant 0 : index
    %c0_28 = arith.constant 0 : index
    %44 = vector.load %arg3[%c0_26, %c0_27, %c0_28] : memref<2x1x32xf32, #tpu.memory_space<vmem>>, vector<1x1x32xf32>
    %45 = vector.shape_cast %44 : vector<1x1x32xf32> to vector<1x32xf32>
    %46 = vector.broadcast %45 : vector<1x32xf32> to vector<10x32xf32>
    %47 = arith.mulf %40, %46 : vector<10x32xf32>
    %cst_29 = arith.constant dense<0.000000e+00> : vector<10x10xf32>
    %48 = tpu.matmul %47, %41, %cst_29 {dimension_numbers = #tpu.dot_dimension_numbers<[1], [1], [0], [0], [0, 0, 1, 0], [], []>} : vector<10x32xf32>, vector<10x32xf32>, vector<10x10xf32> -> vector<10x10xf32>
    %49 = arith.addf %48, %5 : vector<10x10xf32>
    %cst_30 = arith.constant dense<0xFF800000> : vector<10xf32>
    %50 = vector.multi_reduction <maximumf>, %49, %cst_30 [1] : vector<10x10xf32> to vector<10xf32>
    %51 = vector.shape_cast %50 : vector<10xf32> to vector<10x1xf32>
    %52 = vector.broadcast %51 : vector<10x1xf32> to vector<10x10xf32>
    %53 = arith.subf %49, %52 : vector<10x10xf32>
    %54 = math.exp %53 : vector<10x10xf32>
    %cst_31 = arith.constant dense<0.000000e+00> : vector<10xf32>
    %55 = vector.multi_reduction <add>, %54, %cst_31 [1] : vector<10x10xf32> to vector<10xf32>
    %56 = vector.shape_cast %55 : vector<10xf32> to vector<10x1xf32>
    %57 = tpu.reciprocal %56 {approx = true} : vector<10x1xf32> -> vector<10x1xf32>
    %58 = vector.broadcast %57 : vector<10x1xf32> to vector<10x10xf32>
    %59 = arith.mulf %54, %58 : vector<10x10xf32>
    %60 = vector.broadcast %45 : vector<1x32xf32> to vector<10x32xf32>
    %61 = arith.mulf %42, %60 : vector<10x32xf32>
    %cst_32 = arith.constant dense<0.000000e+00> : vector<10x32xf32>
    %62 = tpu.matmul %59, %61, %cst_32 {dimension_numbers = #tpu.dot_dimension_numbers<[1], [0], [0], [1], [0, 0, 1, 1], [], []>} : vector<10x10xf32>, vector<10x32xf32>, vector<10x32xf32> -> vector<10x32xf32>
    %63 = arith.addf %43, %62 : vector<10x32xf32>
    %c1 = arith.constant 1 : index
    %c0_33 = arith.constant 0 : index
    %c0_34 = arith.constant 0 : index
    %64 = vector.load %arg3[%c1, %c0_33, %c0_34] : memref<2x1x32xf32, #tpu.memory_space<vmem>>, vector<1x1x32xf32>
    %65 = vector.shape_cast %64 : vector<1x1x32xf32> to vector<1x32xf32>
    %66 = vector.broadcast %65 : vector<1x32xf32> to vector<10x32xf32>
    %67 = arith.mulf %40, %66 : vector<10x32xf32>
    %cst_35 = arith.constant dense<0.000000e+00> : vector<10x10xf32>
    %68 = tpu.matmul %67, %41, %cst_35 {dimension_numbers = #tpu.dot_dimension_numbers<[1], [1], [0], [0], [0, 0, 1, 0], [], []>} : vector<10x32xf32>, vector<10x32xf32>, vector<10x10xf32> -> vector<10x10xf32>
    %69 = arith.addf %68, %5 : vector<10x10xf32>
    %cst_36 = arith.constant dense<0xFF800000> : vector<10xf32>
    %70 = vector.multi_reduction <maximumf>, %69, %cst_36 [1] : vector<10x10xf32> to vector<10xf32>
    %71 = vector.shape_cast %70 : vector<10xf32> to vector<10x1xf32>
    %72 = vector.broadcast %71 : vector<10x1xf32> to vector<10x10xf32>
    %73 = arith.subf %69, %72 : vector<10x10xf32>
    %74 = math.exp %73 : vector<10x10xf32>
    %cst_37 = arith.constant dense<0.000000e+00> : vector<10xf32>
    %75 = vector.multi_reduction <add>, %74, %cst_37 [1] : vector<10x10xf32> to vector<10xf32>
    %76 = vector.shape_cast %75 : vector<10xf32> to vector<10x1xf32>
    %77 = tpu.reciprocal %76 {approx = true} : vector<10x1xf32> -> vector<10x1xf32>
    %78 = vector.broadcast %77 : vector<10x1xf32> to vector<10x10xf32>
    %79 = arith.mulf %74, %78 : vector<10x10xf32>
    %80 = vector.broadcast %65 : vector<1x32xf32> to vector<10x32xf32>
    %81 = arith.mulf %42, %80 : vector<10x32xf32>
    %cst_38 = arith.constant dense<0.000000e+00> : vector<10x32xf32>
    %82 = tpu.matmul %79, %81, %cst_38 {dimension_numbers = #tpu.dot_dimension_numbers<[1], [0], [0], [1], [0, 0, 1, 1], [], []>} : vector<10x10xf32>, vector<10x32xf32>, vector<10x32xf32> -> vector<10x32xf32>
    %83 = arith.addf %63, %82 : vector<10x32xf32>
    %84 = arith.truncf %83 : vector<10x32xf32> to vector<10x32xbf16>
    %c0_39 = arith.constant 0 : index
    %c0_40 = arith.constant 0 : index
    %c0_41 = arith.constant 0 : index
    %85 = vector.load %arg10[%c0_39, %c0_40, %c0_41] : memref<2x32x32xbf16, #tpu.memory_space<vmem>>, vector<1x32x32xbf16>
    %86 = vector.shape_cast %85 : vector<1x32x32xbf16> to vector<32x32xbf16>
    %cst_42 = arith.constant dense<0.000000e+00> : vector<10x32xf32>
    %87 = tpu.matmul %84, %86, %cst_42 {dimension_numbers = #tpu.dot_dimension_numbers<[1], [0], [0], [1], [0, 0, 1, 1], [], []>} : vector<10x32xbf16>, vector<32x32xbf16>, vector<10x32xf32> -> vector<10x32xf32>
    %c0_43 = arith.constant 0 : index
    %c0_44 = arith.constant 0 : index
    %c0_45 = arith.constant 0 : index
    %88 = vector.load %arg11[%c0_43, %c0_44, %c0_45] : memref<2x1x32xf32, #tpu.memory_space<vmem>>, vector<1x1x32xf32>
    %89 = vector.shape_cast %88 : vector<1x1x32xf32> to vector<1x32xf32>
    %90 = vector.broadcast %89 : vector<1x32xf32> to vector<10x32xf32>
    %91 = arith.addf %87, %90 : vector<10x32xf32>
    %92 = arith.addf %4, %91 : vector<10x32xf32>
    %c0_46 = arith.constant 0 : index
    %c0_47 = arith.constant 0 : index
    %c0_48 = arith.constant 0 : index
    %93 = vector.load %arg12[%c0_46, %c0_47, %c0_48] : memref<2x1x32xf32, #tpu.memory_space<vmem>>, vector<1x1x32xf32>
    %94 = vector.shape_cast %93 : vector<1x1x32xf32> to vector<1x32xf32>
    %c0_49 = arith.constant 0 : index
    %c0_50 = arith.constant 0 : index
    %c0_51 = arith.constant 0 : index
    %95 = vector.load %arg13[%c0_49, %c0_50, %c0_51] : memref<2x1x32xf32, #tpu.memory_space<vmem>>, vector<1x1x32xf32>
    %96 = vector.shape_cast %95 : vector<1x1x32xf32> to vector<1x32xf32>
    %cst_52 = arith.constant dense<0.000000e+00> : vector<10xf32>
    %97 = vector.multi_reduction <add>, %92, %cst_52 [1] : vector<10x32xf32> to vector<10xf32>
    %98 = vector.shape_cast %97 : vector<10xf32> to vector<10x1xf32>
    %cst_53 = arith.constant 3.200000e+01 : f32
    %99 = vector.broadcast %cst_53 : f32 to vector<10x1xf32>
    %100 = arith.divf %98, %99 : vector<10x1xf32>
    %101 = vector.broadcast %100 : vector<10x1xf32> to vector<10x32xf32>
    %102 = arith.subf %92, %101 : vector<10x32xf32>
    %103 = arith.mulf %102, %102 : vector<10x32xf32>
    %cst_54 = arith.constant dense<0.000000e+00> : vector<10xf32>
    %104 = vector.multi_reduction <add>, %103, %cst_54 [1] : vector<10x32xf32> to vector<10xf32>
    %105 = vector.shape_cast %104 : vector<10xf32> to vector<10x1xf32>
    %cst_55 = arith.constant 3.200000e+01 : f32
    %106 = vector.broadcast %cst_55 : f32 to vector<10x1xf32>
    %107 = arith.divf %105, %106 : vector<10x1xf32>
    %108 = vector.broadcast %100 : vector<10x1xf32> to vector<10x32xf32>
    %109 = arith.subf %92, %108 : vector<10x32xf32>
    %cst_56 = arith.constant 9.99999996E-13 : f32
    %110 = vector.broadcast %cst_56 : f32 to vector<10x1xf32>
    %111 = arith.addf %107, %110 : vector<10x1xf32>
    %112 = math.rsqrt %111 : vector<10x1xf32>
    %113 = vector.broadcast %112 : vector<10x1xf32> to vector<10x32xf32>
    %114 = arith.mulf %109, %113 : vector<10x32xf32>
    %115 = vector.broadcast %94 : vector<1x32xf32> to vector<10x32xf32>
    %116 = arith.mulf %114, %115 : vector<10x32xf32>
    %117 = vector.broadcast %96 : vector<1x32xf32> to vector<10x32xf32>
    %118 = arith.addf %116, %117 : vector<10x32xf32>
    %119 = arith.truncf %118 : vector<10x32xf32> to vector<10x32xbf16>
    %c0_57 = arith.constant 0 : index
    %c0_58 = arith.constant 0 : index
    %c0_59 = arith.constant 0 : index
    %120 = vector.load %arg14[%c0_57, %c0_58, %c0_59] : memref<2x32x64xbf16, #tpu.memory_space<vmem>>, vector<1x32x64xbf16>
    %121 = vector.shape_cast %120 : vector<1x32x64xbf16> to vector<32x64xbf16>
    %cst_60 = arith.constant dense<0.000000e+00> : vector<10x64xf32>
    %122 = tpu.matmul %119, %121, %cst_60 {dimension_numbers = #tpu.dot_dimension_numbers<[1], [0], [0], [1], [0, 0, 1, 1], [], []>} : vector<10x32xbf16>, vector<32x64xbf16>, vector<10x64xf32> -> vector<10x64xf32>
    %c0_61 = arith.constant 0 : index
    %c0_62 = arith.constant 0 : index
    %c0_63 = arith.constant 0 : index
    %123 = vector.load %arg15[%c0_61, %c0_62, %c0_63] : memref<2x1x64xf32, #tpu.memory_space<vmem>>, vector<1x1x64xf32>
    %124 = vector.shape_cast %123 : vector<1x1x64xf32> to vector<1x64xf32>
    %125 = vector.broadcast %124 : vector<1x64xf32> to vector<10x64xf32>
    %126 = arith.addf %122, %125 : vector<10x64xf32>
    %127 = arith.mulf %126, %126 : vector<10x64xf32>
    %128 = arith.mulf %126, %127 : vector<10x64xf32>
    %cst_64 = arith.constant 4.471500e-02 : f32
    %129 = vector.broadcast %cst_64 : f32 to vector<10x64xf32>
    %130 = arith.mulf %129, %128 : vector<10x64xf32>
    %131 = arith.addf %126, %130 : vector<10x64xf32>
    %cst_65 = arith.constant 0.797884583 : f32
    %132 = vector.broadcast %cst_65 : f32 to vector<10x64xf32>
    %133 = arith.mulf %132, %131 : vector<10x64xf32>
    %134 = math.tanh %133 : vector<10x64xf32>
    %cst_66 = arith.constant 1.000000e+00 : f32
    %135 = vector.broadcast %cst_66 : f32 to vector<10x64xf32>
    %136 = arith.addf %135, %134 : vector<10x64xf32>
    %cst_67 = arith.constant 5.000000e-01 : f32
    %137 = vector.broadcast %cst_67 : f32 to vector<10x64xf32>
    %138 = arith.mulf %137, %136 : vector<10x64xf32>
    %139 = arith.mulf %126, %138 : vector<10x64xf32>
    %140 = arith.truncf %139 : vector<10x64xf32> to vector<10x64xbf16>
    %c0_68 = arith.constant 0 : index
    %c0_69 = arith.constant 0 : index
    %c0_70 = arith.constant 0 : index
    %141 = vector.load %arg16[%c0_68, %c0_69, %c0_70] : memref<2x64x32xbf16, #tpu.memory_space<vmem>>, vector<1x64x32xbf16>
    %142 = vector.shape_cast %141 : vector<1x64x32xbf16> to vector<64x32xbf16>
    %cst_71 = arith.constant dense<0.000000e+00> : vector<10x32xf32>
    %143 = tpu.matmul %140, %142, %cst_71 {dimension_numbers = #tpu.dot_dimension_numbers<[1], [0], [0], [1], [0, 0, 1, 1], [], []>} : vector<10x64xbf16>, vector<64x32xbf16>, vector<10x32xf32> -> vector<10x32xf32>
    %c0_72 = arith.constant 0 : index
    %c0_73 = arith.constant 0 : index
    %c0_74 = arith.constant 0 : index
    %144 = vector.load %arg17[%c0_72, %c0_73, %c0_74] : memref<2x1x32xf32, #tpu.memory_space<vmem>>, vector<1x1x32xf32>
    %145 = vector.shape_cast %144 : vector<1x1x32xf32> to vector<1x32xf32>
    %146 = vector.broadcast %145 : vector<1x32xf32> to vector<10x32xf32>
    %147 = arith.addf %143, %146 : vector<10x32xf32>
    %148 = arith.addf %92, %147 : vector<10x32xf32>
    %c1_75 = arith.constant 1 : index
    %c0_76 = arith.constant 0 : index
    %c0_77 = arith.constant 0 : index
    %149 = vector.load %arg6[%c1_75, %c0_76, %c0_77] : memref<2x1x32xf32, #tpu.memory_space<vmem>>, vector<1x1x32xf32>
    %150 = vector.shape_cast %149 : vector<1x1x32xf32> to vector<1x32xf32>
    %c1_78 = arith.constant 1 : index
    %c0_79 = arith.constant 0 : index
    %c0_80 = arith.constant 0 : index
    %151 = vector.load %arg7[%c1_78, %c0_79, %c0_80] : memref<2x1x32xf32, #tpu.memory_space<vmem>>, vector<1x1x32xf32>
    %152 = vector.shape_cast %151 : vector<1x1x32xf32> to vector<1x32xf32>
    %cst_81 = arith.constant dense<0.000000e+00> : vector<10xf32>
    %153 = vector.multi_reduction <add>, %148, %cst_81 [1] : vector<10x32xf32> to vector<10xf32>
    %154 = vector.shape_cast %153 : vector<10xf32> to vector<10x1xf32>
    %cst_82 = arith.constant 3.200000e+01 : f32
    %155 = vector.broadcast %cst_82 : f32 to vector<10x1xf32>
    %156 = arith.divf %154, %155 : vector<10x1xf32>
    %157 = vector.broadcast %156 : vector<10x1xf32> to vector<10x32xf32>
    %158 = arith.subf %148, %157 : vector<10x32xf32>
    %159 = arith.mulf %158, %158 : vector<10x32xf32>
    %cst_83 = arith.constant dense<0.000000e+00> : vector<10xf32>
    %160 = vector.multi_reduction <add>, %159, %cst_83 [1] : vector<10x32xf32> to vector<10xf32>
    %161 = vector.shape_cast %160 : vector<10xf32> to vector<10x1xf32>
    %cst_84 = arith.constant 3.200000e+01 : f32
    %162 = vector.broadcast %cst_84 : f32 to vector<10x1xf32>
    %163 = arith.divf %161, %162 : vector<10x1xf32>
    %164 = vector.broadcast %156 : vector<10x1xf32> to vector<10x32xf32>
    %165 = arith.subf %148, %164 : vector<10x32xf32>
    %cst_85 = arith.constant 9.99999996E-13 : f32
    %166 = vector.broadcast %cst_85 : f32 to vector<10x1xf32>
    %167 = arith.addf %163, %166 : vector<10x1xf32>
    %168 = math.rsqrt %167 : vector<10x1xf32>
    %169 = vector.broadcast %168 : vector<10x1xf32> to vector<10x32xf32>
    %170 = arith.mulf %165, %169 : vector<10x32xf32>
    %171 = vector.broadcast %150 : vector<1x32xf32> to vector<10x32xf32>
    %172 = arith.mulf %170, %171 : vector<10x32xf32>
    %173 = vector.broadcast %152 : vector<1x32xf32> to vector<10x32xf32>
    %174 = arith.addf %172, %173 : vector<10x32xf32>
    %175 = arith.truncf %174 : vector<10x32xf32> to vector<10x32xbf16>
    %c1_86 = arith.constant 1 : index
    %c0_87 = arith.constant 0 : index
    %c0_88 = arith.constant 0 : index
    %176 = vector.load %arg8[%c1_86, %c0_87, %c0_88] : memref<2x32x96xbf16, #tpu.memory_space<vmem>>, vector<1x32x96xbf16>
    %177 = vector.shape_cast %176 : vector<1x32x96xbf16> to vector<32x96xbf16>
    %cst_89 = arith.constant dense<0.000000e+00> : vector<10x96xf32>
    %178 = tpu.matmul %175, %177, %cst_89 {dimension_numbers = #tpu.dot_dimension_numbers<[1], [0], [0], [1], [0, 0, 1, 1], [], []>} : vector<10x32xbf16>, vector<32x96xbf16>, vector<10x96xf32> -> vector<10x96xf32>
    %c1_90 = arith.constant 1 : index
    %c0_91 = arith.constant 0 : index
    %c0_92 = arith.constant 0 : index
    %179 = vector.load %arg9[%c1_90, %c0_91, %c0_92] : memref<2x1x96xf32, #tpu.memory_space<vmem>>, vector<1x1x96xf32>
    %180 = vector.shape_cast %179 : vector<1x1x96xf32> to vector<1x96xf32>
    %181 = vector.broadcast %180 : vector<1x96xf32> to vector<10x96xf32>
    %182 = arith.addf %178, %181 : vector<10x96xf32>
    %183 = vector.extract_strided_slice %182 {offsets = [0, 0], sizes = [10, 32], strides = [1, 1]} : vector<10x96xf32> to vector<10x32xf32>
    %184 = vector.extract_strided_slice %182 {offsets = [0, 32], sizes = [10, 32], strides = [1, 1]} : vector<10x96xf32> to vector<10x32xf32>
    %185 = vector.extract_strided_slice %182 {offsets = [0, 64], sizes = [10, 32], strides = [1, 1]} : vector<10x96xf32> to vector<10x32xf32>
    %cst_93 = arith.constant 0.000000e+00 : f32
    %186 = vector.broadcast %cst_93 : f32 to vector<10x32xf32>
    %c0_94 = arith.constant 0 : index
    %c0_95 = arith.constant 0 : index
    %c0_96 = arith.constant 0 : index
    %187 = vector.load %arg3[%c0_94, %c0_95, %c0_96] : memref<2x1x32xf32, #tpu.memory_space<vmem>>, vector<1x1x32xf32>
    %188 = vector.shape_cast %187 : vector<1x1x32xf32> to vector<1x32xf32>
    %189 = vector.broadcast %188 : vector<1x32xf32> to vector<10x32xf32>
    %190 = arith.mulf %183, %189 : vector<10x32xf32>
    %cst_97 = arith.constant dense<0.000000e+00> : vector<10x10xf32>
    %191 = tpu.matmul %190, %184, %cst_97 {dimension_numbers = #tpu.dot_dimension_numbers<[1], [1], [0], [0], [0, 0, 1, 0], [], []>} : vector<10x32xf32>, vector<10x32xf32>, vector<10x10xf32> -> vector<10x10xf32>
    %192 = arith.addf %191, %5 : vector<10x10xf32>
    %cst_98 = arith.constant dense<0xFF800000> : vector<10xf32>
    %193 = vector.multi_reduction <maximumf>, %192, %cst_98 [1] : vector<10x10xf32> to vector<10xf32>
    %194 = vector.shape_cast %193 : vector<10xf32> to vector<10x1xf32>
    %195 = vector.broadcast %194 : vector<10x1xf32> to vector<10x10xf32>
    %196 = arith.subf %192, %195 : vector<10x10xf32>
    %197 = math.exp %196 : vector<10x10xf32>
    %cst_99 = arith.constant dense<0.000000e+00> : vector<10xf32>
    %198 = vector.multi_reduction <add>, %197, %cst_99 [1] : vector<10x10xf32> to vector<10xf32>
    %199 = vector.shape_cast %198 : vector<10xf32> to vector<10x1xf32>
    %200 = tpu.reciprocal %199 {approx = true} : vector<10x1xf32> -> vector<10x1xf32>
    %201 = vector.broadcast %200 : vector<10x1xf32> to vector<10x10xf32>
    %202 = arith.mulf %197, %201 : vector<10x10xf32>
    %203 = vector.broadcast %188 : vector<1x32xf32> to vector<10x32xf32>
    %204 = arith.mulf %185, %203 : vector<10x32xf32>
    %cst_100 = arith.constant dense<0.000000e+00> : vector<10x32xf32>
    %205 = tpu.matmul %202, %204, %cst_100 {dimension_numbers = #tpu.dot_dimension_numbers<[1], [0], [0], [1], [0, 0, 1, 1], [], []>} : vector<10x10xf32>, vector<10x32xf32>, vector<10x32xf32> -> vector<10x32xf32>
    %206 = arith.addf %186, %205 : vector<10x32xf32>
    %c1_101 = arith.constant 1 : index
    %c0_102 = arith.constant 0 : index
    %c0_103 = arith.constant 0 : index
    %207 = vector.load %arg3[%c1_101, %c0_102, %c0_103] : memref<2x1x32xf32, #tpu.memory_space<vmem>>, vector<1x1x32xf32>
    %208 = vector.shape_cast %207 : vector<1x1x32xf32> to vector<1x32xf32>
    %209 = vector.broadcast %208 : vector<1x32xf32> to vector<10x32xf32>
    %210 = arith.mulf %183, %209 : vector<10x32xf32>
    %cst_104 = arith.constant dense<0.000000e+00> : vector<10x10xf32>
    %211 = tpu.matmul %210, %184, %cst_104 {dimension_numbers = #tpu.dot_dimension_numbers<[1], [1], [0], [0], [0, 0, 1, 0], [], []>} : vector<10x32xf32>, vector<10x32xf32>, vector<10x10xf32> -> vector<10x10xf32>
    %212 = arith.addf %211, %5 : vector<10x10xf32>
    %cst_105 = arith.constant dense<0xFF800000> : vector<10xf32>
    %213 = vector.multi_reduction <maximumf>, %212, %cst_105 [1] : vector<10x10xf32> to vector<10xf32>
    %214 = vector.shape_cast %213 : vector<10xf32> to vector<10x1xf32>
    %215 = vector.broadcast %214 : vector<10x1xf32> to vector<10x10xf32>
    %216 = arith.subf %212, %215 : vector<10x10xf32>
    %217 = math.exp %216 : vector<10x10xf32>
    %cst_106 = arith.constant dense<0.000000e+00> : vector<10xf32>
    %218 = vector.multi_reduction <add>, %217, %cst_106 [1] : vector<10x10xf32> to vector<10xf32>
    %219 = vector.shape_cast %218 : vector<10xf32> to vector<10x1xf32>
    %220 = tpu.reciprocal %219 {approx = true} : vector<10x1xf32> -> vector<10x1xf32>
    %221 = vector.broadcast %220 : vector<10x1xf32> to vector<10x10xf32>
    %222 = arith.mulf %217, %221 : vector<10x10xf32>
    %223 = vector.broadcast %208 : vector<1x32xf32> to vector<10x32xf32>
    %224 = arith.mulf %185, %223 : vector<10x32xf32>
    %cst_107 = arith.constant dense<0.000000e+00> : vector<10x32xf32>
    %225 = tpu.matmul %222, %224, %cst_107 {dimension_numbers = #tpu.dot_dimension_numbers<[1], [0], [0], [1], [0, 0, 1, 1], [], []>} : vector<10x10xf32>, vector<10x32xf32>, vector<10x32xf32> -> vector<10x32xf32>
    %226 = arith.addf %206, %225 : vector<10x32xf32>
    %227 = arith.truncf %226 : vector<10x32xf32> to vector<10x32xbf16>
    %c1_108 = arith.constant 1 : index
    %c0_109 = arith.constant 0 : index
    %c0_110 = arith.constant 0 : index
    %228 = vector.load %arg10[%c1_108, %c0_109, %c0_110] : memref<2x32x32xbf16, #tpu.memory_space<vmem>>, vector<1x32x32xbf16>
    %229 = vector.shape_cast %228 : vector<1x32x32xbf16> to vector<32x32xbf16>
    %cst_111 = arith.constant dense<0.000000e+00> : vector<10x32xf32>
    %230 = tpu.matmul %227, %229, %cst_111 {dimension_numbers = #tpu.dot_dimension_numbers<[1], [0], [0], [1], [0, 0, 1, 1], [], []>} : vector<10x32xbf16>, vector<32x32xbf16>, vector<10x32xf32> -> vector<10x32xf32>
    %c1_112 = arith.constant 1 : index
    %c0_113 = arith.constant 0 : index
    %c0_114 = arith.constant 0 : index
    %231 = vector.load %arg11[%c1_112, %c0_113, %c0_114] : memref<2x1x32xf32, #tpu.memory_space<vmem>>, vector<1x1x32xf32>
    %232 = vector.shape_cast %231 : vector<1x1x32xf32> to vector<1x32xf32>
    %233 = vector.broadcast %232 : vector<1x32xf32> to vector<10x32xf32>
    %234 = arith.addf %230, %233 : vector<10x32xf32>
    %235 = arith.addf %148, %234 : vector<10x32xf32>
    %c1_115 = arith.constant 1 : index
    %c0_116 = arith.constant 0 : index
    %c0_117 = arith.constant 0 : index
    %236 = vector.load %arg12[%c1_115, %c0_116, %c0_117] : memref<2x1x32xf32, #tpu.memory_space<vmem>>, vector<1x1x32xf32>
    %237 = vector.shape_cast %236 : vector<1x1x32xf32> to vector<1x32xf32>
    %c1_118 = arith.constant 1 : index
    %c0_119 = arith.constant 0 : index
    %c0_120 = arith.constant 0 : index
    %238 = vector.load %arg13[%c1_118, %c0_119, %c0_120] : memref<2x1x32xf32, #tpu.memory_space<vmem>>, vector<1x1x32xf32>
    %239 = vector.shape_cast %238 : vector<1x1x32xf32> to vector<1x32xf32>
    %cst_121 = arith.constant dense<0.000000e+00> : vector<10xf32>
    %240 = vector.multi_reduction <add>, %235, %cst_121 [1] : vector<10x32xf32> to vector<10xf32>
    %241 = vector.shape_cast %240 : vector<10xf32> to vector<10x1xf32>
    %cst_122 = arith.constant 3.200000e+01 : f32
    %242 = vector.broadcast %cst_122 : f32 to vector<10x1xf32>
    %243 = arith.divf %241, %242 : vector<10x1xf32>
    %244 = vector.broadcast %243 : vector<10x1xf32> to vector<10x32xf32>
    %245 = arith.subf %235, %244 : vector<10x32xf32>
    %246 = arith.mulf %245, %245 : vector<10x32xf32>
    %cst_123 = arith.constant dense<0.000000e+00> : vector<10xf32>
    %247 = vector.multi_reduction <add>, %246, %cst_123 [1] : vector<10x32xf32> to vector<10xf32>
    %248 = vector.shape_cast %247 : vector<10xf32> to vector<10x1xf32>
    %cst_124 = arith.constant 3.200000e+01 : f32
    %249 = vector.broadcast %cst_124 : f32 to vector<10x1xf32>
    %250 = arith.divf %248, %249 : vector<10x1xf32>
    %251 = vector.broadcast %243 : vector<10x1xf32> to vector<10x32xf32>
    %252 = arith.subf %235, %251 : vector<10x32xf32>
    %cst_125 = arith.constant 9.99999996E-13 : f32
    %253 = vector.broadcast %cst_125 : f32 to vector<10x1xf32>
    %254 = arith.addf %250, %253 : vector<10x1xf32>
    %255 = math.rsqrt %254 : vector<10x1xf32>
    %256 = vector.broadcast %255 : vector<10x1xf32> to vector<10x32xf32>
    %257 = arith.mulf %252, %256 : vector<10x32xf32>
    %258 = vector.broadcast %237 : vector<1x32xf32> to vector<10x32xf32>
    %259 = arith.mulf %257, %258 : vector<10x32xf32>
    %260 = vector.broadcast %239 : vector<1x32xf32> to vector<10x32xf32>
    %261 = arith.addf %259, %260 : vector<10x32xf32>
    %262 = arith.truncf %261 : vector<10x32xf32> to vector<10x32xbf16>
    %c1_126 = arith.constant 1 : index
    %c0_127 = arith.constant 0 : index
    %c0_128 = arith.constant 0 : index
    %263 = vector.load %arg14[%c1_126, %c0_127, %c0_128] : memref<2x32x64xbf16, #tpu.memory_space<vmem>>, vector<1x32x64xbf16>
    %264 = vector.shape_cast %263 : vector<1x32x64xbf16> to vector<32x64xbf16>
    %cst_129 = arith.constant dense<0.000000e+00> : vector<10x64xf32>
    %265 = tpu.matmul %262, %264, %cst_129 {dimension_numbers = #tpu.dot_dimension_numbers<[1], [0], [0], [1], [0, 0, 1, 1], [], []>} : vector<10x32xbf16>, vector<32x64xbf16>, vector<10x64xf32> -> vector<10x64xf32>
    %c1_130 = arith.constant 1 : index
    %c0_131 = arith.constant 0 : index
    %c0_132 = arith.constant 0 : index
    %266 = vector.load %arg15[%c1_130, %c0_131, %c0_132] : memref<2x1x64xf32, #tpu.memory_space<vmem>>, vector<1x1x64xf32>
    %267 = vector.shape_cast %266 : vector<1x1x64xf32> to vector<1x64xf32>
    %268 = vector.broadcast %267 : vector<1x64xf32> to vector<10x64xf32>
    %269 = arith.addf %265, %268 : vector<10x64xf32>
    %270 = arith.mulf %269, %269 : vector<10x64xf32>
    %271 = arith.mulf %269, %270 : vector<10x64xf32>
    %cst_133 = arith.constant 4.471500e-02 : f32
    %272 = vector.broadcast %cst_133 : f32 to vector<10x64xf32>
    %273 = arith.mulf %272, %271 : vector<10x64xf32>
    %274 = arith.addf %269, %273 : vector<10x64xf32>
    %cst_134 = arith.constant 0.797884583 : f32
    %275 = vector.broadcast %cst_134 : f32 to vector<10x64xf32>
    %276 = arith.mulf %275, %274 : vector<10x64xf32>
    %277 = math.tanh %276 : vector<10x64xf32>
    %cst_135 = arith.constant 1.000000e+00 : f32
    %278 = vector.broadcast %cst_135 : f32 to vector<10x64xf32>
    %279 = arith.addf %278, %277 : vector<10x64xf32>
    %cst_136 = arith.constant 5.000000e-01 : f32
    %280 = vector.broadcast %cst_136 : f32 to vector<10x64xf32>
    %281 = arith.mulf %280, %279 : vector<10x64xf32>
    %282 = arith.mulf %269, %281 : vector<10x64xf32>
    %283 = arith.truncf %282 : vector<10x64xf32> to vector<10x64xbf16>
    %c1_137 = arith.constant 1 : index
    %c0_138 = arith.constant 0 : index
    %c0_139 = arith.constant 0 : index
    %284 = vector.load %arg16[%c1_137, %c0_138, %c0_139] : memref<2x64x32xbf16, #tpu.memory_space<vmem>>, vector<1x64x32xbf16>
    %285 = vector.shape_cast %284 : vector<1x64x32xbf16> to vector<64x32xbf16>
    %cst_140 = arith.constant dense<0.000000e+00> : vector<10x32xf32>
    %286 = tpu.matmul %283, %285, %cst_140 {dimension_numbers = #tpu.dot_dimension_numbers<[1], [0], [0], [1], [0, 0, 1, 1], [], []>} : vector<10x64xbf16>, vector<64x32xbf16>, vector<10x32xf32> -> vector<10x32xf32>
    %c1_141 = arith.constant 1 : index
    %c0_142 = arith.constant 0 : index
    %c0_143 = arith.constant 0 : index
    %287 = vector.load %arg17[%c1_141, %c0_142, %c0_143] : memref<2x1x32xf32, #tpu.memory_space<vmem>>, vector<1x1x32xf32>
    %288 = vector.shape_cast %287 : vector<1x1x32xf32> to vector<1x32xf32>
    %289 = vector.broadcast %288 : vector<1x32xf32> to vector<10x32xf32>
    %290 = arith.addf %286, %289 : vector<10x32xf32>
    %291 = arith.addf %235, %290 : vector<10x32xf32>
    %c0_144 = arith.constant 0 : index
    %c0_145 = arith.constant 0 : index
    %292 = vector.load %arg5[%c0_144, %c0_145] : memref<2x10xf32, #tpu.memory_space<vmem>>, vector<2x10xf32>
    %cst_146 = arith.constant dense<0.000000e+00> : vector<2x32xf32>
    %293 = tpu.matmul %292, %291, %cst_146 {dimension_numbers = #tpu.dot_dimension_numbers<[1], [0], [0], [1], [0, 0, 1, 1], [], []>} : vector<2x10xf32>, vector<10x32xf32>, vector<2x32xf32> -> vector<2x32xf32>
    %c0_147 = arith.constant 0 : index
    %c0_148 = arith.constant 0 : index
    %294 = vector.load %arg18[%c0_147, %c0_148] : memref<1x32xf32, #tpu.memory_space<vmem>>, vector<1x32xf32>
    %c0_149 = arith.constant 0 : index
    %c0_150 = arith.constant 0 : index
    %295 = vector.load %arg19[%c0_149, %c0_150] : memref<1x32xf32, #tpu.memory_space<vmem>>, vector<1x32xf32>
    %cst_151 = arith.constant dense<0.000000e+00> : vector<2xf32>
    %296 = vector.multi_reduction <add>, %293, %cst_151 [1] : vector<2x32xf32> to vector<2xf32>
    %297 = vector.shape_cast %296 : vector<2xf32> to vector<2x1xf32>
    %cst_152 = arith.constant 3.200000e+01 : f32
    %298 = vector.broadcast %cst_152 : f32 to vector<2x1xf32>
    %299 = arith.divf %297, %298 : vector<2x1xf32>
    %300 = vector.broadcast %299 : vector<2x1xf32> to vector<2x32xf32>
    %301 = arith.subf %293, %300 : vector<2x32xf32>
    %302 = arith.mulf %301, %301 : vector<2x32xf32>
    %cst_153 = arith.constant dense<0.000000e+00> : vector<2xf32>
    %303 = vector.multi_reduction <add>, %302, %cst_153 [1] : vector<2x32xf32> to vector<2xf32>
    %304 = vector.shape_cast %303 : vector<2xf32> to vector<2x1xf32>
    %cst_154 = arith.constant 3.200000e+01 : f32
    %305 = vector.broadcast %cst_154 : f32 to vector<2x1xf32>
    %306 = arith.divf %304, %305 : vector<2x1xf32>
    %307 = vector.broadcast %299 : vector<2x1xf32> to vector<2x32xf32>
    %308 = arith.subf %293, %307 : vector<2x32xf32>
    %cst_155 = arith.constant 9.99999996E-13 : f32
    %309 = vector.broadcast %cst_155 : f32 to vector<2x1xf32>
    %310 = arith.addf %306, %309 : vector<2x1xf32>
    %311 = math.rsqrt %310 : vector<2x1xf32>
    %312 = vector.broadcast %311 : vector<2x1xf32> to vector<2x32xf32>
    %313 = arith.mulf %308, %312 : vector<2x32xf32>
    %314 = vector.broadcast %294 : vector<1x32xf32> to vector<2x32xf32>
    %315 = arith.mulf %313, %314 : vector<2x32xf32>
    %316 = vector.broadcast %295 : vector<1x32xf32> to vector<2x32xf32>
    %317 = arith.addf %315, %316 : vector<2x32xf32>
    %c0_156 = arith.constant 0 : index
    %c0_157 = arith.constant 0 : index
    %318 = vector.load %arg20[%c0_156, %c0_157] : memref<2x32xf32, #tpu.memory_space<vmem>>, vector<2x32xf32>
    tpu.vector_store %arg20[%c0_156, %c0_157], %317 {strides = array<i32>} : memref<2x32xf32, #tpu.memory_space<vmem>>, vector<2x32xf32>,
    return
  }
}

</mosaic_0001>

<bundles_post_ra>
// kernel: tile.9
= control target key start
LH: loop header
LB: loop body
LE: loop exit
PB: predicated region body
PF: predicated region fallthrough
CT: control target
= control target key end

     0   :  { %vm3_vm0 = vcmask 261120   ;;  %s34_s0 = inlined_call_operand.vmem [shape: f32[2,5,32], index: 0, kind: input, shape index: {}]   ;;  %s35_s1 = inlined_call_operand.vmem [shape: f32[10,32], index: 1, kind: output, shape index: {}]  }
   0x1   :  { %v2_v0 = vld [vmem:[%s34_s0] sm:$0x1f]   ;;  %v10_v1 = vld [vmem:[%s34_s0 + $0x8] sm:$0x1f]  }
   0x2   :  { %4 = vst.msk [vmem:[%s35_s1] sm:$0x1f] %vm3_vm0, %v2_v0   ;;  %11 = vst.msk [vmem:[%s35_s1 + $0x5] sm:$0x1f] %vm3_vm0, %v10_v1  }

// kernel: phikon_forward.1
= control target key start
LH: loop header
LB: loop body
LE: loop exit
PB: predicated region body
PF: predicated region fallthrough
CT: control target
= control target key end

     0   :  { %s3731_s0 = inlined_call_operand.vmem [shape: bf16[10,768], index: 0, kind: input, shape index: {}]   ;;  %s3732_s1 = inlined_call_operand.vmem [shape: bf16[768,32], index: 1, kind: input, shape index: {}]   ;;  %s3733_s2 = inlined_call_operand.vmem [shape: f32[10,32], index: 2, kind: input, shape index: {}]   ;;  %s3734_s3 = inlined_call_operand.vmem [shape: f32[2,1,32], index: 3, kind: input, shape index: {}]   ;;  %s3735_s4 = inlined_call_operand.vmem [shape: f32[10,10], index: 4, kind: input, shape index: {}]   ;;  %s3736_s5 = inlined_call_operand.vmem [shape: f32[2,10], index: 5, kind: input, shape index: {}]   ;;  %s3737_s6 = inlined_call_operand.vmem [shape: f32[2,1,32], index: 6, kind: input, shape index: {}]   ;;  %s3738_s7 = inlined_call_operand.vmem [shape: f32[2,1,32], index: 7, kind: input, shape index: {}]   ;;  %s3739_s8 = inlined_call_operand.vmem [shape: bf16[2,32,96], index: 8, kind: input, shape index: {}]   ;;  %s3740_s9 = inlined_call_operand.vmem [shape: f32[2,1,96], index: 9, kind: input, shape index: {}]   ;;  %s3741_s10 = inlined_call_operand.vmem [shape: bf16[2,32,32], index: 10, kind: input, shape index: {}]   ;;  %s3742_s11 = inlined_call_operand.vmem [shape: f32[2,1,32], index: 11, kind: input, shape index: {}]   ;;  %s3743_s12 = inlined_call_operand.vmem [shape: f32[2,1,32], index: 12, kind: input, shape index: {}]   ;;  %s3744_s13 = inlined_call_operand.vmem [shape: f32[2,1,32], index: 13, kind: input, shape index: {}]   ;;  %s3745_s14 = inlined_call_operand.vmem [shape: bf16[2,32,64], index: 14, kind: input, shape index: {}]   ;;  %s3746_s15 = inlined_call_operand.vmem [shape: f32[2,1,64], index: 15, kind: input, shape index: {}]   ;;  %s3747_s16 = inlined_call_operand.vmem [shape: bf16[2,64,32], index: 16, kind: input, shape index: {}]   ;;  %s3748_s17 = inlined_call_operand.vmem [shape: f32[2,1,32], index: 17, kind: input, shape index: {}]   ;;  %s3749_s18 = inlined_call_operand.vmem [shape: f32[1,32], index: 18, kind: input, shape index: {}]   ;;  %s3750_s19 = inlined_call_operand.vmem [shape: f32[1,32], index: 19, kind: input, shape index: {}]   ;;  %s3751_s20 = inlined_call_operand.hbm [shape: f32[2,32], index: 20, kind: output, shape index: {}]  }
   0x1   :  { %3757 = sst [smem:[#allocation5_spill]] %s3731_s0 }
   0x2   :  { %3758 = sst [smem:[#allocation6_spill]] %s3732_s1 }
   0x3   :  { %3759 = sst [smem:[#allocation7_spill]] %s3733_s2 }
   0x4   :  { %3760 = sst [smem:[#allocation8_spill]] %s3734_s3 }
   0x5   :  { %3761 = sst [smem:[#allocation9_spill]] %s3735_s4 }
   0x6   :  { %s3762_s23 = sld [smem:[#allocation6_spill]]  ;;  %s3763_s28 = sld [smem:[#allocation5_spill]] }
   0xc   :  { %v2897_v0 = vld [vmem:[%s3762_s23 + $0x40] sm:$0xff]   ;;  %v2901_v4 = vld [vmem:[%s3762_s23 + $0x48] sm:$0xff]   ;;  %v2905_v8 = vld [vmem:[%s3762_s23 + $0x50] sm:$0xff]  }
   0xd   :  { %v2898_v1 = vld [vmem:[%s3762_s23] sm:$0xff]   ;;  %2540 = vmatprep.subr.bf16.mxu0 %v2897_v0  ;;  %v2902_v5 = vld [vmem:[%s3762_s23 + $0x8] sm:$0xff]   ;;  %v2906_v9 = vld [vmem:[%s3762_s23 + $0x10] sm:$0xff]  }
   0xe   :  { %v2899_v2 = vld [vmem:[%s3762_s23 + $0xc0] sm:$0xff]   ;;  %2541 = vmatpush3.bf16.msra.mxu0 %v2898_v1  ;;  %v2903_v6 = vld [vmem:[%s3762_s23 + $0xc8] sm:$0xff]   ;;  %v2907_v10 = vld [vmem:[%s3762_s23 + $0xd0] sm:$0xff]  }
   0xf   :  { %v2900_v3 = vld [vmem:[%s3762_s23 + $0x80] sm:$0xff]   ;;  %2562 = vmatprep.subr.bf16.mxu1 %v2899_v2  ;;  %2542 = vmatprep.subr.bf16.mxu0 %v2901_v4  ;;  %v2904_v7 = vld [vmem:[%s3762_s23 + $0x88] sm:$0xff]   ;;  %v2908_v11 = vld [vmem:[%s3762_s23 + $0x90] sm:$0xff]  }
  0x10   :  { %2563 = vmatpush3.bf16.msra.mxu1 %v2900_v3  ;;  %v2909_v12 = vld [vmem:[%s3762_s23 + $0x58] sm:$0xff]   ;;  %v2913_v16 = vld [vmem:[%s3762_s23 + $0x60] sm:$0xff]   ;;  %v2917_v20 = vld [vmem:[%s3762_s23 + $0x68] sm:$0xff]  }
  0x11   :  { %2564 = vmatprep.subr.bf16.mxu1 %v2903_v6  ;;  %v2910_v13 = vld [vmem:[%s3762_s23 + $0x18] sm:$0xff]   ;;  %v2914_v17 = vld [vmem:[%s3762_s23 + $0x20] sm:$0xff]   ;;  %v2918_v21 = vld [vmem:[%s3762_s23 + $0x28] sm:$0xff]  }
  0x12   :  { %2543 = vmatpush3.bf16.msra.mxu0 %v2902_v5  ;;  %v2911_v14 = vld [vmem:[%s3762_s23 + $0xd8] sm:$0xff]   ;;  %v2915_v18 = vld [vmem:[%s3762_s23 + $0xe0] sm:$0xff]   ;;  %v2919_v22 = vld [vmem:[%s3762_s23 + $0xe8] sm:$0xff]  }
  0x13   :  { %2544 = vmatprep.subr.bf16.mxu0 %v2905_v8  ;;  %v2912_v15 = vld [vmem:[%s3762_s23 + $0x98] sm:$0xff]   ;;  %v2916_v19 = vld [vmem:[%s3762_s23 + $0xa0] sm:$0xff]   ;;  %v2920_v23 = vld [vmem:[%s3762_s23 + $0xa8] sm:$0xff]  }
  0x14   :  { %2565 = vmatpush3.bf16.msra.mxu1 %v2904_v7  ;;  %v2921_v24 = vld [vmem:[%s3762_s23 + $0x70] sm:$0xff]   ;;  %v2925_v28 = vld [vmem:[%s3762_s23 + $0x78] sm:$0xff]   ;;  %v2932_v34 = vld [vmem:[%s3762_s23 + $0x140] sm:$0xff]  }
  0x15   :  { %2566 = vmatprep.subr.bf16.mxu1 %v2907_v10  ;;  %v2922_v25 = vld [vmem:[%s3762_s23 + $0x30] sm:$0xff]   ;;  %v2926_v29 = vld [vmem:[%s3762_s23 + $0x38] sm:$0xff]   ;;  %v2933_v35 = vld [vmem:[%s3763_s28 + $0x8] ss:$24 sps:$4 sm:$0x1f]  }
  0x16   :  { %2545 = vmatpush3.bf16.msra.mxu0 %v2906_v9  ;;  %v2923_v26 = vld [vmem:[%s3762_s23 + $0xf0] sm:$0xff]   ;;  %v2927_v30 = vld [vmem:[%s3762_s23 + $0xf8] sm:$0xff]   ;;  %v2935_v36 = vld [vmem:[%s3763_s28 + $0xc] ss:$24 sps:$4 sm:$0x1f]  }
  0x17   :  { %2546 = vmatprep.subr.bf16.mxu0 %v2909_v12  ;;  %v2924_v27 = vld [vmem:[%s3762_s23 + $0xb0] sm:$0xff]   ;;  %v2928_v31 = vld [vmem:[%s3763_s28] ss:$24 sps:$4 sm:$0x1f]   ;;  %562 = vmatprep.mubr.bf16.mxu1 %v2935_v36  ;;  %v2937_v38 = vld [vmem:[%s3762_s23 + $0x148] sm:$0xff]  }
  0x18   :  { %2567 = vmatpush3.bf16.msra.mxu1 %v2908_v11  ;;  %v2930_v32 = vld [vmem:[%s3763_s28 + $0x4] ss:$24 sps:$4 sm:$0x1f]   ;;  %v2938_v39 = vld [vmem:[%s3762_s23 + $0x108] sm:$0xff]   ;;  %v2939_v40 = vld [vmem:[%s3762_s23 + $0x150] sm:$0xff]  }
  0x19   :  { %2568 = vmatprep.subr.bf16.mxu1 %v2911_v14  ;;  %v2931_v33 = vld [vmem:[%s3762_s23 + $0xb8] sm:$0xff]   ;;  %521 = vmatprep.mubr.bf16.mxu0 %v2930_v32  ;;  %v2936_v37 = vld [vmem:[%s3762_s23 + $0x100] sm:$0xff]   ;;  %v2940_v41 = vld [vmem:[%s3762_s23 + $0x110] sm:$0xff]  }
  0x1a   :  { %2547 = vmatpush3.bf16.msra.mxu0 %v2910_v13  ;;  %v2941_v42 = vld [vmem:[%s3762_s23 + $0x158] sm:$0xff]   ;;  %v2943_v44 = vld [vmem:[%s3762_s23 + $0x160] sm:$0xff]   ;;  %v2945_v46 = vld [vmem:[%s3762_s23 + $0x168] sm:$0xff]  }
  0x1b   :  { %2548 = vmatprep.subr.bf16.mxu0 %v2913_v16  ;;  %v2942_v43 = vld [vmem:[%s3762_s23 + $0x118] sm:$0xff]   ;;  %v2944_v45 = vld [vmem:[%s3762_s23 + $0x120] sm:$0xff]   ;;  %v2946_v47 = vld [vmem:[%s3762_s23 + $0x128] sm:$0xff]  }
  0x1c   :  { %2569 = vmatpush3.bf16.msra.mxu1 %v2912_v15  ;;  %v2953_v48 = vld [vmem:[%s3763_s28 + $0x14] ss:$24 sps:$4 sm:$0x1f]   ;;  %v2949_v51 = vld [vmem:[%s3762_s23 + $0x178] sm:$0xff]  }
  0x1d   :  { %2570 = vmatprep.subr.bf16.mxu1 %v2915_v18  ;;  %v2947_v49 = vld [vmem:[%s3762_s23 + $0x170] sm:$0xff]   ;;  %v2950_v52 = vld [vmem:[%s3762_s23 + $0x138] sm:$0xff]  }
  0x1e   :  { %2549 = vmatpush3.bf16.msra.mxu0 %v2914_v17  ;;  %v2948_v50 = vld [vmem:[%s3762_s23 + $0x130] sm:$0xff]  }
  0x1f   :  { %2550 = vmatprep.subr.bf16.mxu0 %v2917_v20  ;;  %v2951_v53 = vld [vmem:[%s3763_s28 + $0x10] ss:$24 sps:$4 sm:$0x1f]  }
  0x20   :  { %2571 = vmatpush3.bf16.msra.mxu1 %v2916_v19 }
  0x21   :  { %2572 = vmatprep.subr.bf16.mxu1 %v2919_v22 }
  0x22   :  { %2551 = vmatpush3.bf16.msra.mxu0 %v2918_v21 }
  0x23   :  { %2552 = vmatprep.subr.bf16.mxu0 %v2921_v24 }
  0x24   :  { %2573 = vmatpush3.bf16.msra.mxu1 %v2920_v23 }
  0x25   :  { %2574 = vmatprep.subr.bf16.mxu1 %v2923_v26 }
  0x26   :  { %2553 = vmatpush3.bf16.msra.mxu0 %v2922_v25 }
  0x27   :  { %2554 = vmatprep.subr.bf16.mxu0 %v2925_v28 }
  0x28   :  { %2575 = vmatpush3.bf16.msra.mxu1 %v2924_v27 }
  0x29   :  { %2576 = vmatprep.subr.bf16.mxu1 %v2927_v30 }
  0x2a   :  { %2555 = vmatpush3.bf16.msra.mxu0 %v2926_v29 }
  0x2b   :  { %2584 = vmatprep.subr.bf16.mxu0 %v2932_v34 }
  0x2c   :  { %2577 = vmatpush3.bf16.msra.mxu1 %v2931_v33 }
  0x2d   :  { %522 = vmatmul.mubr.bf16.vlgmr.msra.gmra.mrb[0].mxu0 %v2928_v31 }
  0x2e   :  { %2585 = vmatpush3.bf16.msra.mxu0 %v2936_v37  ;;  %603 = vmatprep.mubr.bf16.mxu0 %v2953_v48 }
  0x2f   :  { %563 = vmatmul.mubr.bf16.vlgmr.msra.gmra.mrb[0].mxu1 %v2933_v35  ;;  %2586 = vmatprep.subr.bf16.mxu0 %v2937_v38 }
  0x32   :  { %2587 = vmatpush3.bf16.msra.mxu0 %v2938_v39 }
  0x33   :  { %2588 = vmatprep.subr.bf16.mxu0 %v2939_v40 }
  0x36   :  { %2589 = vmatpush3.bf16.msra.mxu0 %v2940_v41 }
  0x37   :  { %2590 = vmatprep.subr.bf16.mxu0 %v2941_v42 }
  0x3a   :  { %2591 = vmatpush3.bf16.msra.mxu0 %v2942_v43 }
  0x3b   :  { %2592 = vmatprep.subr.bf16.mxu0 %v2943_v44 }
  0x3e   :  { %2593 = vmatpush3.bf16.msra.mxu0 %v2944_v45 }
  0x3f   :  { %2594 = vmatprep.subr.bf16.mxu0 %v2945_v46 }
  0x42   :  { %2595 = vmatpush3.bf16.msra.mxu0 %v2946_v47 }
  0x43   :  { %2596 = vmatprep.subr.bf16.mxu0 %v2947_v49 }
  0x46   :  { %2597 = vmatpush3.bf16.msra.mxu0 %v2948_v50 }
  0x47   :  { %2598 = vmatprep.subr.bf16.mxu0 %v2949_v51 }
  0x4a   :  { %2599 = vmatpush3.bf16.msra.mxu0 %v2950_v52 }
  0x4b   :  { %25 = vsyncpa [#allocation3], 0  ;;  %s3764_s24 = sld [smem:[#allocation7_spill]]  ;;  %vm616_vm0 = vcmask 261120   ;;  %vm620_vm1 = vcmask 254976   ;;  %v2954_v28 = vld [vmem:[%s3739_s8] sm:$0xff]  }
  0x4c   :  { %v3056_v29 = vmov 0.0   ;;  %v2955_v30 = vld [vmem:[%s3739_s8 + $0x8] sm:$0xff]   ;;  %vm3057_vm2 = vmmov 0   ;;  %v2433_v39 = vld [vmem:[%s3737_s6] ss:$0 sm:$0xff]  ;;  %s3058_s2 = smov 96   ;;  %vm3390_vm3 = vmpackc.low %vm616_vm0, %vm616_vm0 }
  0x4d   :  { %604 = vmatmul.mubr.bf16.vlgmr.msra.gmra.mrb[4].mxu0 %v2951_v53  ;;  %2669 = vmatprep.subr.bf16.mxu1 %v3056_v29  ;;  %v2434_v43 = vld [vmem:[%s3738_s7] ss:$0 sm:$0xff]  ;;  %s3059_s23 = smov 64   ;;  %s3768_s27 = sld [smem:[#allocation9_spill]]  ;;  %vm829_vm4 = vcmask 80896   ;;  %vm833_vm5 = vcmask 74752  }
  0x4e   :  { %2721 = vmatprep.subr.bf16.mxu0 %v3056_v29  ;;  %2670 = vmatpush3.bf16.msra.mxu1 %v2954_v28  ;;  %v2435_v48 = vld [vmem:[%s3740_s9] ss:$0 sm:$0xff]  ;;  %vm989_vm6 = vcmask 1041408   ;;  %vm3060_vm7 = vmmov 1   ;;  %vm1397_vm9 = vcmask 523264  }
  0x4f   :  { %2671 = vmatprep.subr.bf16.mxu1 %v3056_v29  ;;  %2673 = vmatprep.mubr.msk.bf16.mxu1 %vm3057_vm2, %v3056_v29  ;;  %vm3454_vm8 = vmpackc.low %vm989_vm6, %vm3060_vm7 }
  0x50   :  { %2729 = vmatprep.mubr.msk.bf16.mxu0 %vm3057_vm2, %v3056_v29 }
  0x51   :  { %v169_v55 = vld [vmem:[%s3764_s24] sm:$0xff]  ;;  %v170_v60 = vld [vmem:[%s3764_s24 + $0x8] sm:$0x3]  ;;  %s3765_s24 = sld [smem:[#allocation8_spill]] }
  0x52   :  { %2672 = vmatpush3.bf16.msra.mxu1 %v2955_v30 }
  0x57   :  { %v3374_v50 = vld [vmem:[%s3765_s24] ss:$0 sm:$0xff] }
 0x100   :  { %v2556_v54 = vpop.f32.mrb[0].mxu0 }
 0x101   :  { %v2557_v56 = vpop.f32.mrb[1].mxu0 }
 0x102   :  { %v2558_v57 = vadd.f32 %v2557_v56, %v2556_v54  ;;  %v2559_v58 = vpop.f32.mrb[2].mxu0  ;;  %v2578_v59 = vpop.f32.mrb[0].mxu1 }
 0x103   :  { %v2560_v61 = vpop.f32.mrb[3].mxu0  ;;  %v2579_v0 = vpop.f32.mrb[1].mxu1 }
 0x104   :  { %v524_v62 = vadd.f32 %v2558_v57, %v169_v55  ;;  %v2561_v63 = vadd.f32 %v2560_v61, %v2559_v58  ;;  %v2580_v1 = vadd.f32 %v2579_v0, %v2578_v59  ;;  %v2581_v2 = vpop.f32.mrb[2].mxu1 }
 0x105   :  { %v2582_v4 = vpop.f32.mrb[3].mxu1 }
 0x106   :  { %v527_v3 = vadd.f32 %v2561_v63, %v170_v60  ;;  %v565_v5 = vadd.f32 %v2580_v1, %v524_v62  ;;  %v2583_v6 = vadd.f32 %v2582_v4, %v2581_v2  ;;  %v3403_v63 = vld [vmem:[%s3765_s24 + $0x1] ss:$0 sm:$0xff] }
 0x108   :  { %v568_v7 = vadd.f32 %v2583_v6, %v527_v3  ;;  %v3419_v6 = vld [vmem:[%s3768_s27] sm:$0xff] }
 0x120   :  { %v2600_v8 = vpop.f32.mrb[4].mxu0 }
 0x121   :  { %v2601_v9 = vpop.f32.mrb[5].mxu0 }
 0x122   :  { %v2602_v10 = vadd.f32 %v2601_v9, %v2600_v8  ;;  %v2603_v11 = vpop.f32.mrb[6].mxu0  ;;  %v3425_v9 = vld [vmem:[%s3768_s27 + $0x8] sm:$0x3] }
 0x123   :  { %v2604_v12 = vpop.f32.mrb[7].mxu0 }
 0x124   :  { %v3336_v13 = vadd.f32 %v2602_v10, %v565_v5  ;;  %v2605_v14 = vadd.f32 %v2604_v12, %v2603_v11 }
 0x126   :  { %v3338_v15 = vadd.f32 %v2605_v14, %v568_v7  ;;  %v617_v16 = vsel %vm616_vm0, %v3336_v13, 0.0 }
 0x127   :  { %618 = vadd.xlane.f32.xlu0 %v617_v16 }
 0x128   :  { %v621_v17 = vsel %vm620_vm1, %v3338_v15, 0.0 }
 0x12b   :  { %622 = vadd.xlane.f32.xlu0 %v621_v17 }
 0x1b4   :  { %v619_v18 = vpop.xlane.xlu0 %618 }
 0x1b5   :  { %v625_v19 = vmul.f32 0.03125, %v619_v18 }
 0x1b7   :  { %v627_v20 = vsub.f32 %v3336_v13, %v625_v19 }
 0x1b8   :  { %v623_v21 = vpop.xlane.xlu0 %622 }
 0x1b9   :  { %v626_v22 = vmul.f32 0.03125, %v623_v21  ;;  %v629_v23 = vmul.f32 %v627_v20, %v627_v20 }
 0x1bb   :  { %v628_v24 = vsub.f32 %v3338_v15, %v626_v22  ;;  %v631_v25 = vsel %vm616_vm0, %v629_v23, 0.0 }
 0x1bc   :  { %632 = vadd.xlane.f32.xlu1 %v631_v25 }
 0x1bd   :  { %v630_v26 = vmul.f32 %v628_v24, %v628_v24 }
 0x1bf   :  { %v634_v27 = vsel %vm620_vm1, %v630_v26, 0.0 }
 0x1c0   :  { %635 = vadd.xlane.f32.xlu1 %v634_v27 }
 0x249   :  { %v633_v31 = vpop.xlane.xlu1 %632 }
 0x24a   :  { %v637_v32 = vmul.f32 0.03125, %v633_v31 }
 0x24c   :  { %v639_v33 = vadd.f32 1e-12, %v637_v32 }
 0x24d   :  { %v636_v34 = vpop.xlane.xlu1 %635 }
 0x24e   :  { %2974 = vrsqrt.f32 %v639_v33  ;;  %v638_v35 = vmul.f32 0.03125, %v636_v34 }
 0x250   :  { %v640_v36 = vadd.f32 1e-12, %v638_v35 }
 0x252   :  { %2976 = vrsqrt.f32 %v640_v36 }
 0x258   :  { %v2975_v37 = vpop.eup %2974 }
 0x259   :  { %v643_v38 = vmul.f32 %v2975_v37, %v627_v20 }
 0x25b   :  { %v651_v41 = vmul.f32 %v2433_v39, %v643_v38 }
 0x25c   :  { %v2977_v40 = vpop.eup %2976 }
 0x25d   :  { %v644_v42 = vmul.f32 %v2977_v40, %v628_v24  ;;  %v659_v45 = vadd.f32 %v2434_v43, %v651_v41 }
 0x25f   :  { %v652_v44 = vmul.f32 %v2433_v39, %v644_v42 }
 0x261   :  { %v660_v46 = vadd.f32 %v2434_v43, %v652_v44 }
 0x263   :  { %v661_v47 = vpack.c.bf16 %v660_v46, %v659_v45 }
 0x265   :  { %2674 = vmatmul.mubr.msk.bf16.vlgmr.msra.gmra.mrb[4].mxu1 %vm616_vm0, %v661_v47 }
 0x338   :  { %v722_v49 = vpop.f32.mrb[4].mxu1 }
 0x339   :  { %v3376_v51 = vadd.f32 %v2435_v48, %v722_v49  ;;  %v2675_v52 = vpop.f32.mrb[5].mxu1 }
 0x33a   :  { %v725_v53 = vpop.f32.mrb[6].mxu1 }
 0x33b   :  { %v3378_v54 = vadd.f32 %v2435_v48, %v725_v53  ;;  %v2676_v55 = vpop.f32.mrb[7].mxu1  ;;  %v736_v56 = vmul.f32 %v3374_v50, %v3376_v51  ;;  %v866_v1 = vmul.f32 %v3403_v63, %v3376_v51 }
 0x33d   :  { %2681 = vmatprep.mubr.msk.f32.mxu1 %vm616_vm0, %v736_v56  ;;  %v2867_v57 = vpack.i.bf16 %v3378_v54, %v3376_v51  ;;  %v737_v0 = vmul.f32 %v3374_v50, %v3378_v54  ;;  %v867_v2 = vmul.f32 %v3403_v63, %v3378_v54 }
 0x33f   :  { %2868 = vrot.lane.b32.xlu0 %v2867_v57, %s3058_s2 }
 0x343   :  { %853 = vrot.lane.b32.xlu0 %v3374_v50, %s3059_s23 }
 0x3b1   :  { %v2869_v58 = vpop.permute.xlu0 %2868 }
 0x3b2   :  { %v2871_v59 = vunpack.i.h.bf16 %v2869_v58  ;;  %v2870_v60 = vunpack.i.l.bf16 %v2869_v58 }
 0x3b4   :  { %v2804_v62 = vpack.c.bf16 %v2871_v59, %v2870_v60 }
 0x3b5   :  { %v3438_v37 = vpop.permute.xlu0 %853 }
 0x3b6   :  { %2806 = vmatprep.subr.msk.bf16.mxu1 %vm3390_vm3, %v2804_v62  ;;  %v856_v38 = vmul.f32 %v3438_v37, %v3376_v51  ;;  %v857_v39 = vmul.f32 %v3438_v37, %v3378_v54 }
 0x3b7   :  { %2809 = vmatpush3.bf16.xpose.msk.msra.mxu1 %vm3390_vm3, %v2804_v62 }
 0x3b8   :  { %2812 = vmatprep.subr.msk.bf16.mxu1 %vm3390_vm3, %v2804_v62  ;;  %v2877_v43 = vpack.i.bf16 %v857_v39, %v856_v38  ;;  %v2958_v38 = vld [vmem:[%s3745_s14] sm:$0xff]   ;;  %v2959_v39 = vld [vmem:[%s3745_s14 + $0x8] sm:$0xff]  }
 0x3be   :  { %2682 = vmatmul.mubr.msk.f32.vlgmr.msra.gmra.mrb[8].mxu1 %vm616_vm0, %v737_v0 }
 0x3bf   :  { %2815 = vmatpush3.bf16.xpose.msk.msra.mxu1 %vm3390_vm3, %v2804_v62  ;;  %2688 = vmatprep.mubr.msk.f32.mxu1 %vm616_vm0, %v866_v1 }
 0x3c6   :  { %2689 = vmatmul.mubr.msk.f32.vlgmr.msra.gmra.mrb[10].mxu1 %vm616_vm0, %v867_v2 }
 0x491   :  { %v2683_v3 = vpop.f32.mrb[8].mxu1 }
 0x492   :  { %v820_v4 = vpop.f32.mrb[9].mxu1  ;;  %v826_v16 = vadd.f32 %v2683_v3, %v3425_v9 }
 0x493   :  { %v821_v12 = vadd.f32 %v820_v4, %v3419_v6 }
 0x494   :  { %v834_v18 = vsel %vm833_vm5, %v826_v16, -inf }
 0x495   :  { %v830_v17 = vsel %vm829_vm4, %v821_v12, -inf }
 0x499   :  { %v2690_v5 = vpop.f32.mrb[10].mxu1 }
 0x49a   :  { %v940_v7 = vpop.f32.mrb[11].mxu1  ;;  %v946_v10 = vadd.f32 %v2690_v5, %v3425_v9 }
 0x49b   :  { %v941_v8 = vadd.f32 %v940_v7, %v3419_v6 }
 0x49c   :  { %v952_v14 = vsel %vm833_vm5, %v946_v10, -inf }
 0x49d   :  { %v949_v11 = vsel %vm829_vm4, %v941_v8, -inf }
 0x49e   :  { %950 = vmax.xlane.f32.xlu1 %v949_v11  ;;  %v2957_v11 = vld [vmem:[%s3741_s10 + $0x8] sm:$0xff]  }
 0x4a2   :  { %953 = vmax.xlane.f32.xlu1 %v952_v14 }
 0x4a6   :  { %831 = vmax.xlane.f32.xlu1 %v830_v17  ;;  %v2456_v17 = vld [vmem:[%s3742_s11] ss:$0 sm:$0xff] }
 0x4aa   :  { %835 = vmax.xlane.f32.xlu1 %v834_v18 }
 0x4bb   :  { %971 = vrot.lane.b32.xlu1 %v3403_v63, %s3059_s23 }
 0x52b   :  { %v951_v19 = vpop.xlane.xlu1 %950 }
 0x52c   :  { %v955_v27 = vsub.f32 %v941_v8, %v951_v19  ;;  %v2956_v8 = vld [vmem:[%s3741_s10] sm:$0xff]  }
 0x52e   :  { %v957_v32 = vmul.f32 1.442695, %v955_v27 }
 0x52f   :  { %v954_v20 = vpop.xlane.xlu1 %953 }
 0x530   :  { %v956_v21 = vsub.f32 %v946_v10, %v954_v20 }
 0x532   :  { %v959_v22 = vmul.f32 1.442695, %v956_v21 }
 0x533   :  { %v832_v23 = vpop.xlane.xlu1 %831 }
 0x534   :  { %2978 = vpow2.f32 %v959_v22  ;;  %v837_v24 = vsub.f32 %v821_v12, %v832_v23 }
 0x536   :  { %v839_v28 = vmul.f32 1.442695, %v837_v24 }
 0x537   :  { %v836_v25 = vpop.xlane.xlu1 %835 }
 0x538   :  { %v838_v26 = vsub.f32 %v826_v16, %v836_v25 }
 0x53a   :  { %v841_v30 = vmul.f32 1.442695, %v838_v26 }
 0x53b   :  { %v3447_v44 = vpop.permute.xlu1 %971 }
 0x53c   :  { %2980 = vpow2.f32 %v841_v30  ;;  %v974_v45 = vmul.f32 %v3447_v44, %v3376_v51  ;;  %v975_v46 = vmul.f32 %v3447_v44, %v3378_v54 }
 0x53d   :  { %2982 = vpow2.f32 %v839_v28 }
 0x53e   :  { %v2979_v31 = vpop.eup %2978  ;;  %2984 = vpow2.f32 %v957_v32  ;;  %v2872_v47 = vpack.i.bf16 %v975_v46, %v974_v45 }
 0x53f   :  { %v964_v33 = vsel %vm833_vm5, %v2979_v31, 0.0 }
 0x540   :  { %965 = vadd.xlane.f32.xlu1 %v964_v33 }
 0x546   :  { %v2981_v34 = vpop.eup %2980 }
 0x547   :  { %v846_v35 = vsel %vm833_vm5, %v2981_v34, 0.0  ;;  %v2983_v36 = vpop.eup %2982 }
 0x548   :  { %847 = vadd.xlane.f32.xlu0 %v846_v35  ;;  %v843_v40 = vsel %vm829_vm4, %v2983_v36, 0.0  ;;  %v2985_v41 = vpop.eup %2984 }
 0x549   :  { %v961_v42 = vsel %vm829_vm4, %v2985_v41, 0.0 }
 0x54c   :  { %844 = vadd.xlane.f32.xlu0 %v843_v40 }
 0x550   :  { %962 = vadd.xlane.f32.xlu0 %v961_v42 }
 0x551   :  { %2878 = vrot.lane.b32.xlu1 %v2877_v43, %s3059_s23 }
 0x566   :  { %2873 = vrot.lane.b32.xlu0 %v2872_v47, %s3059_s23 }
 0x5cd   :  { %v966_v49 = vpop.xlane.xlu1 %965 }
 0x5ce   :  { %2986 = vrcp.f32 %v966_v49  ;;  %v2460_v49 = vld [vmem:[%s3743_s12] ss:$0 sm:$0xff] }
 0x5d1   :  { %v2879_v55 = vpop.permute.xlu1 %2878 }
 0x5d2   :  { %v2881_v57 = vunpack.i.h.bf16 %v2879_v55  ;;  %v2880_v58 = vunpack.i.l.bf16 %v2879_v55 }
 0x5d4   :  { %v2822_v0 = vpack.c.bf16 %v2881_v57, %v2880_v58 }
 0x5d5   :  { %v848_v48 = vpop.xlane.xlu0 %847 }
 0x5d8   :  { %v2987_v62 = vpop.eup %2986 }
 0x5d9   :  { %v845_v52 = vpop.xlane.xlu0 %844  ;;  %v970_v4 = vmul.f32 %v2987_v62, %v2979_v31  ;;  %v2961_v62 = vld [vmem:[%s3747_s16 + $0x8] sm:$0xff]  }
 0x5da   :  { %2988 = vrcp.f32 %v845_v52 }
 0x5dd   :  { %v963_v53 = vpop.xlane.xlu0 %962 }
 0x5de   :  { %2990 = vrcp.f32 %v963_v53 }
 0x5df   :  { %2992 = vrcp.f32 %v848_v48 }
 0x5e1   :  { %v2874_v56 = vpop.permute.xlu0 %2873 }
 0x5e2   :  { %v2876_v59 = vunpack.i.h.bf16 %v2874_v56  ;;  %v2875_v51 = vunpack.i.l.bf16 %v2874_v56  ;;  %v2461_v56 = vld [vmem:[%s3744_s13] ss:$0 sm:$0xff] }
 0x5e4   :  { %v2816_v60 = vpack.c.bf16 %v2876_v59, %v2875_v51  ;;  %v2989_v1 = vpop.eup %2988 }
 0x5e5   :  { %v851_v5 = vmul.f32 %v2989_v1, %v2983_v36  ;;  %v2963_v1 = vld [vmem:[%s3747_s16 + $0x18] sm:$0xff]  }
 0x5e6   :  { %2818 = vmatprep.subr.msk.bf16.mxu1 %vm3454_vm8, %v2816_v60 }
 0x5e7   :  { %2821 = vmatpush3.bf16.msk.msra.mxu1 %vm3454_vm8, %v2816_v60  ;;  %v2960_v60 = vld [vmem:[%s3747_s16] sm:$0xff]  }
 0x5e8   :  { %v2991_v2 = vpop.eup %2990  ;;  %2824 = vmatprep.subr.msk.bf16.mxu1 %vm3454_vm8, %v2822_v0  ;;  %2722 = vmatpush3.bf16.msra.mxu0 %v2960_v60 }
 0x5e9   :  { %v969_v3 = vmul.f32 %v2991_v2, %v2985_v41  ;;  %v2993_v7 = vpop.eup %2992  ;;  %2723 = vmatprep.subr.bf16.mxu0 %v3056_v29  ;;  %v2462_v2 = vld [vmem:[%s3746_s15] ss:$0 sm:$0xff] }
 0x5ea   :  { %v852_v10 = vmul.f32 %v2993_v7, %v2981_v34 }
 0x5eb   :  { %2695 = vmatprep.mubr.msk.f32.mxu1 %vm829_vm4, %v969_v3 }
 0x5ec   :  { %2696 = vmatmul.mubr.msk.f32.vlgmr.msra.gmra.mrb[12].mxu1 %vm829_vm4, %v970_v4  ;;  %2724 = vmatpush3.bf16.msra.mxu0 %v2961_v62 }
 0x5ed   :  { %2827 = vmatpush3.bf16.msk.msra.mxu1 %vm3454_vm8, %v2822_v0  ;;  %2702 = vmatprep.mubr.msk.f32.mxu1 %vm829_vm4, %v851_v5  ;;  %v2962_v0 = vld [vmem:[%s3747_s16 + $0x10] sm:$0xff]  }
 0x5ee   :  { %2705 = vmatprep.subr.bf16.mxu1 %v3056_v29  ;;  %2725 = vmatprep.subr.bf16.mxu0 %v3056_v29 }
 0x5f0   :  { %2726 = vmatpush3.bf16.msra.mxu0 %v2962_v0 }
 0x5f1   :  { %2727 = vmatprep.subr.bf16.mxu0 %v3056_v29 }
 0x5f4   :  { %2703 = vmatmul.mubr.msk.f32.vlgmr.msra.gmra.mrb[12].mxu1 %vm829_vm4, %v852_v10  ;;  %2728 = vmatpush3.bf16.msra.mxu0 %v2963_v1 }
 0x5f5   :  { %2706 = vmatpush3.bf16.msra.mxu1 %v2956_v8  ;;  %2709 = vmatprep.mubr.msk.bf16.mxu1 %vm3057_vm2, %v3056_v29 }
 0x5f6   :  { %2707 = vmatprep.subr.bf16.mxu1 %v3056_v29 }
 0x5f9   :  { %2708 = vmatpush3.bf16.msra.mxu1 %v2957_v11 }
 0x5fa   :  { %2713 = vmatprep.subr.bf16.mxu1 %v3056_v29 }
 0x6c7   :  { %v2704_v12 = vpop.f32.mrb[12].mxu1 }
 0x6c8   :  { %v1148_v14 = vpop.f32.mrb[13].mxu1 }
 0x6c9   :  { %v1157_v16 = vpack.c.bf16 %v2704_v12, %v1148_v14 }
 0x6cb   :  { %2710 = vmatmul.mubr.msk.bf16.vlgmr.msra.gmra.mrb[16].mxu1 %vm616_vm0, %v1157_v16 }
 0x6cc   :  { %2717 = vmatprep.mubr.msk.bf16.mxu1 %vm3057_vm2, %v3056_v29  ;;  %2714 = vmatpush3.bf16.msra.mxu1 %v2958_v38 }
 0x6cd   :  { %2715 = vmatprep.subr.bf16.mxu1 %v3056_v29 }
 0x6d0   :  { %2716 = vmatpush3.bf16.msra.mxu1 %v2959_v39 }
 0x6d1   :  { %2733 = vmatprep.subr.bf16.mxu1 %v3056_v29 }
 0x79e   :  { %v1218_v18 = vpop.f32.mrb[16].mxu1 }
 0x79f   :  { %v1219_v19 = vadd.f32 %v2456_v17, %v1218_v18  ;;  %v2711_v20 = vpop.f32.mrb[17].mxu1 }
 0x7a0   :  { %v1221_v21 = vpop.f32.mrb[18].mxu1 }
 0x7a1   :  { %v3488_v22 = vadd.f32 %v1219_v19, %v3336_v13  ;;  %v1222_v23 = vadd.f32 %v2456_v17, %v1221_v21  ;;  %v2712_v24 = vpop.f32.mrb[19].mxu1 }
 0x7a3   :  { %v3491_v25 = vadd.f32 %v1222_v23, %v3338_v15  ;;  %v1229_v26 = vsel %vm616_vm0, %v3488_v22, 0.0 }
 0x7a4   :  { %1230 = vadd.xlane.f32.xlu1 %v1229_v26 }
 0x7a5   :  { %v1232_v27 = vsel %vm620_vm1, %v3491_v25, 0.0 }
 0x7a6   :  { %1233 = vadd.xlane.f32.xlu0 %v1232_v27 }
 0x831   :  { %v1231_v28 = vpop.xlane.xlu1 %1230 }
 0x832   :  { %v1235_v30 = vmul.f32 0.03125, %v1231_v28 }
 0x833   :  { %v1234_v31 = vpop.xlane.xlu0 %1233 }
 0x834   :  { %v1237_v32 = vsub.f32 %v3488_v22, %v1235_v30  ;;  %v1236_v13 = vmul.f32 0.03125, %v1234_v31 }
 0x836   :  { %v1238_v33 = vsub.f32 %v3491_v25, %v1236_v13  ;;  %v1239_v34 = vmul.f32 %v1237_v32, %v1237_v32 }
 0x838   :  { %v1241_v15 = vsel %vm616_vm0, %v1239_v34, 0.0  ;;  %v1240_v35 = vmul.f32 %v1238_v33, %v1238_v33  ;;  %v2466_v34 = vld [vmem:[%s3748_s17] ss:$0 sm:$0xff] }
 0x839   :  { %1242 = vadd.xlane.f32.xlu0 %v1241_v15 }
 0x83a   :  { %v1244_v36 = vsel %vm620_vm1, %v1240_v35, 0.0 }
 0x83d   :  { %1245 = vadd.xlane.f32.xlu0 %v1244_v36 }
 0x8c6   :  { %v1243_v40 = vpop.xlane.xlu0 %1242 }
 0x8c7   :  { %v1247_v41 = vmul.f32 0.03125, %v1243_v40 }
 0x8c9   :  { %v1249_v42 = vadd.f32 1e-12, %v1247_v41 }
 0x8ca   :  { %v1246_v43 = vpop.xlane.xlu0 %1245 }
 0x8cb   :  { %2994 = vrsqrt.f32 %v1249_v42  ;;  %v1248_v45 = vmul.f32 0.03125, %v1246_v43 }
 0x8cd   :  { %v1250_v46 = vadd.f32 1e-12, %v1248_v45 }
 0x8cf   :  { %2996 = vrsqrt.f32 %v1250_v46 }
 0x8d5   :  { %v2995_v47 = vpop.eup %2994 }
 0x8d6   :  { %v1253_v48 = vmul.f32 %v2995_v47, %v1237_v32 }
 0x8d8   :  { %v1261_v53 = vmul.f32 %v2460_v49, %v1253_v48 }
 0x8d9   :  { %v2997_v52 = vpop.eup %2996 }
 0x8da   :  { %v1254_v55 = vmul.f32 %v2997_v52, %v1238_v33  ;;  %v1269_v58 = vadd.f32 %v2461_v56, %v1261_v53 }
 0x8dc   :  { %v1262_v57 = vmul.f32 %v2460_v49, %v1254_v55 }
 0x8de   :  { %v1270_v59 = vadd.f32 %v2461_v56, %v1262_v57  ;;  %v2964_v57 = vld [vmem:[%s3739_s8 + $0x10] sm:$0xff]  }
 0x8e0   :  { %v1271_v51 = vpack.c.bf16 %v1270_v59, %v1269_v58  ;;  %v2965_v58 = vld [vmem:[%s3739_s8 + $0x18] sm:$0xff]  }
 0x8e2   :  { %2718 = vmatmul.mubr.msk.bf16.vlgmr.msra.gmra.mrb[20].mxu1 %vm616_vm0, %v1271_v51 }
 0x8e3   :  { %2737 = vmatprep.mubr.msk.bf16.mxu1 %vm3057_vm2, %v3056_v29  ;;  %2734 = vmatpush3.bf16.msra.mxu1 %v2964_v57 }
 0x8e4   :  { %2735 = vmatprep.subr.bf16.mxu1 %v3056_v29 }
 0x8e7   :  { %2736 = vmatpush3.bf16.msra.mxu1 %v2965_v58 }
 0x9b5   :  { %v1332_v3 = vpop.f32.mrb[20].mxu1 }
 0x9b6   :  { %v1333_v4 = vadd.f32 %v2462_v2, %v1332_v3  ;;  %v2719_v5 = vpop.f32.mrb[21].mxu1  ;;  %v2474_v3 = vld [vmem:[%s3737_s6 + $0x1] ss:$0 sm:$0xff] }
 0x9b7   :  { %v1335_v7 = vpop.f32.mrb[22].mxu1 }
 0x9b8   :  { %v1339_v8 = vmul.f32 %v1333_v4, %v1333_v4  ;;  %v1336_v10 = vadd.f32 %v2462_v2, %v1335_v7  ;;  %v2720_v11 = vpop.f32.mrb[23].mxu1 }
 0x9ba   :  { %v1341_v12 = vmul.f32 %v1339_v8, %v1333_v4  ;;  %v1340_v14 = vmul.f32 %v1336_v10, %v1336_v10 }
 0x9bc   :  { %v1343_v16 = vmul.f32 0.044715, %v1341_v12  ;;  %v1342_v17 = vmul.f32 %v1340_v14, %v1336_v10 }
 0x9be   :  { %v1345_v18 = vadd.f32 %v1343_v16, %v1333_v4  ;;  %v1344_v19 = vmul.f32 0.044715, %v1342_v17  ;;  %v2481_v17 = vld [vmem:[%s3740_s9 + $0x1] ss:$0 sm:$0xff] }
 0x9c0   :  { %v1347_v20 = vmul.f32 0.7978846, %v1345_v18  ;;  %v1346_v21 = vadd.f32 %v1344_v19, %v1336_v10 }
 0x9c2   :  { %2998 = vtanh.f32 %v1347_v20  ;;  %v1348_v23 = vmul.f32 0.7978846, %v1346_v21 }
 0x9c4   :  { %3000 = vtanh.f32 %v1348_v23 }
 0x9cc   :  { %v2999_v24 = vpop.eup %2998 }
 0x9cd   :  { %v1351_v26 = vadd.f32 1.0, %v2999_v24 }
 0x9ce   :  { %v3001_v27 = vpop.eup %3000 }
 0x9cf   :  { %v1353_v28 = vmul.f32 0.5, %v1351_v26  ;;  %v1352_v30 = vadd.f32 1.0, %v3001_v27 }
 0x9d1   :  { %v1354_v31 = vmul.f32 0.5, %v1352_v30  ;;  %v1355_v32 = vmul.f32 %v1353_v28, %v1333_v4 }
 0x9d3   :  { %v1356_v13 = vmul.f32 %v1354_v31, %v1336_v10  ;;  %v2475_v10 = vld [vmem:[%s3738_s7 + $0x1] ss:$0 sm:$0xff] }
 0x9d5   :  { %v1357_v33 = vpack.c.bf16 %v1356_v13, %v1355_v32 }
 0x9d7   :  { %2730 = vmatmul.mubr.msk.bf16.vlgmr.msra.gmra.mrb[8].mxu0 %vm1397_vm9, %v1357_v33 }
 0xaaa   :  { %v1435_v15 = vpop.f32.mrb[8].mxu0 }
 0xaab   :  { %v1436_v35 = vadd.f32 %v2466_v34, %v1435_v15  ;;  %v2731_v36 = vpop.f32.mrb[9].mxu0 }
 0xaac   :  { %v1438_v38 = vpop.f32.mrb[10].mxu0 }
 0xaad   :  { %v3541_v39 = vadd.f32 %v1436_v35, %v3488_v22  ;;  %v1439_v40 = vadd.f32 %v2466_v34, %v1438_v38  ;;  %v2732_v41 = vpop.f32.mrb[11].mxu0 }
 0xaaf   :  { %v3544_v42 = vadd.f32 %v1439_v40, %v3491_v25  ;;  %v1448_v43 = vsel %vm616_vm0, %v3541_v39, 0.0 }
 0xab0   :  { %1449 = vadd.xlane.f32.xlu1 %v1448_v43 }
 0xab1   :  { %v1451_v45 = vsel %vm620_vm1, %v3544_v42, 0.0 }
 0xab2   :  { %1452 = vadd.xlane.f32.xlu0 %v1451_v45 }
 0xb3d   :  { %v1450_v46 = vpop.xlane.xlu1 %1449 }
 0xb3e   :  { %v1454_v47 = vmul.f32 0.03125, %v1450_v46 }
 0xb3f   :  { %v1453_v48 = vpop.xlane.xlu0 %1452 }
 0xb40   :  { %v1456_v49 = vsub.f32 %v3541_v39, %v1454_v47  ;;  %v1455_v22 = vmul.f32 0.03125, %v1453_v48 }
 0xb42   :  { %v1457_v52 = vsub.f32 %v3544_v42, %v1455_v22  ;;  %v1458_v53 = vmul.f32 %v1456_v49, %v1456_v49 }
 0xb44   :  { %v1460_v25 = vsel %vm616_vm0, %v1458_v53, 0.0  ;;  %v1459_v55 = vmul.f32 %v1457_v52, %v1457_v52 }
 0xb45   :  { %1461 = vadd.xlane.f32.xlu1 %v1460_v25 }
 0xb46   :  { %v1463_v56 = vsel %vm620_vm1, %v1459_v55, 0.0 }
 0xb47   :  { %1464 = vadd.xlane.f32.xlu0 %v1463_v56 }
 0xbd2   :  { %v1462_v59 = vpop.xlane.xlu1 %1461 }
 0xbd3   :  { %v1466_v51 = vmul.f32 0.03125, %v1462_v59 }
 0xbd4   :  { %v1465_v60 = vpop.xlane.xlu0 %1464 }
 0xbd5   :  { %v1468_v62 = vadd.f32 1e-12, %v1466_v51  ;;  %v1467_v0 = vmul.f32 0.03125, %v1465_v60 }
 0xbd7   :  { %3002 = vrsqrt.f32 %v1468_v62  ;;  %v1469_v1 = vadd.f32 1e-12, %v1467_v0 }
 0xbd9   :  { %3004 = vrsqrt.f32 %v1469_v1 }
 0xbe1   :  { %v3003_v2 = vpop.eup %3002 }
 0xbe2   :  { %v1472_v4 = vmul.f32 %v3003_v2, %v1456_v49 }
 0xbe3   :  { %v3005_v5 = vpop.eup %3004 }
 0xbe4   :  { %v1480_v7 = vmul.f32 %v2474_v3, %v1472_v4  ;;  %v1473_v8 = vmul.f32 %v3005_v5, %v1457_v52 }
 0xbe6   :  { %v1481_v11 = vmul.f32 %v2474_v3, %v1473_v8  ;;  %v1488_v12 = vadd.f32 %v2475_v10, %v1480_v7  ;;  %v2966_v8 = vld [vmem:[%s3741_s10 + $0x10] sm:$0xff]  }
 0xbe8   :  { %v1489_v14 = vadd.f32 %v2475_v10, %v1481_v11 }
 0xbea   :  { %v1490_v16 = vpack.c.bf16 %v1489_v14, %v1488_v12 }
 0xbec   :  { %2738 = vmatmul.mubr.msk.bf16.vlgmr.msra.gmra.mrb[24].mxu1 %vm616_vm0, %v1490_v16 }
 0xcbf   :  { %v1553_v18 = vpop.f32.mrb[24].mxu1 }
 0xcc0   :  { %v1554_v19 = vadd.f32 %v2481_v17, %v1553_v18  ;;  %v2739_v20 = vpop.f32.mrb[25].mxu1 }
 0xcc1   :  { %v1556_v21 = vpop.f32.mrb[26].mxu1 }
 0xcc2   :  { %v1557_v23 = vadd.f32 %v2481_v17, %v1556_v21  ;;  %v2740_v24 = vpop.f32.mrb[27].mxu1  ;;  %v1560_v26 = vmul.f32 %v3374_v50, %v1554_v19  ;;  %v1677_v27 = vmul.f32 %v3403_v63, %v1554_v19  ;;  %v3576_v30 = vmul.f32 %v1554_v19, %v3438_v37 }
 0xcc3   :  { %v3582_v32 = vmul.f32 %v1554_v19, %v3447_v44 }
 0xcc4   :  { %2745 = vmatprep.mubr.msk.f32.mxu1 %vm616_vm0, %v1560_v26  ;;  %2752 = vmatprep.mubr.msk.f32.mxu0 %vm616_vm0, %v1677_v27  ;;  %v2882_v28 = vpack.i.bf16 %v1557_v23, %v1554_v19  ;;  %v3579_v31 = vmul.f32 %v1557_v23, %v3438_v37  ;;  %v3585_v13 = vmul.f32 %v1557_v23, %v3447_v44 }
 0xcc5   :  { %v1561_v37 = vmul.f32 %v3374_v50, %v1557_v23  ;;  %v1678_v44 = vmul.f32 %v3403_v63, %v1557_v23 }
 0xcc6   :  { %2883 = vrot.lane.b32.xlu1 %v2882_v28, %s3058_s2  ;;  %v2892_v33 = vpack.i.bf16 %v3579_v31, %v3576_v30  ;;  %v2887_v34 = vpack.i.bf16 %v3585_v13, %v3582_v32 }
 0xd38   :  { %v2884_v15 = vpop.permute.xlu1 %2883 }
 0xd39   :  { %v2886_v35 = vunpack.i.h.bf16 %v2884_v15  ;;  %v2885_v36 = vunpack.i.l.bf16 %v2884_v15 }
 0xd3b   :  { %v2828_v38 = vpack.c.bf16 %v2886_v35, %v2885_v36 }
 0xd3d   :  { %2830 = vmatprep.subr.msk.bf16.mxu1 %vm3390_vm3, %v2828_v38  ;;  %2836 = vmatprep.subr.msk.bf16.mxu0 %vm3390_vm3, %v2828_v38 }
 0xd3e   :  { %2833 = vmatpush3.bf16.xpose.msk.msra.mxu1 %vm3390_vm3, %v2828_v38  ;;  %2839 = vmatpush3.bf16.xpose.msk.msra.mxu0 %vm3390_vm3, %v2828_v38  ;;  %v2504_v38 = vld [vmem:[%s3742_s11 + $0x1] ss:$0 sm:$0xff] }
 0xd3f   :  { %2769 = vmatprep.subr.bf16.mxu0 %v3056_v29 }
 0xd45   :  { %2746 = vmatmul.mubr.msk.f32.vlgmr.msra.gmra.mrb[14].mxu1 %vm616_vm0, %v1561_v37  ;;  %2753 = vmatmul.mubr.msk.f32.vlgmr.msra.gmra.mrb[12].mxu0 %vm616_vm0, %v1678_v44 }
 0xd46   :  { %2773 = vmatprep.mubr.msk.bf16.mxu0 %vm3057_vm2, %v3056_v29  ;;  %2770 = vmatpush3.bf16.msra.mxu0 %v2966_v8 }
 0xd47   :  { %2771 = vmatprep.subr.bf16.mxu0 %v3056_v29 }
 0xe18   :  { %v2747_v40 = vpop.f32.mrb[14].mxu1  ;;  %v2754_v41 = vpop.f32.mrb[12].mxu0 }
 0xe19   :  { %v1644_v43 = vpop.f32.mrb[15].mxu1  ;;  %v1751_v45 = vpop.f32.mrb[13].mxu0  ;;  %v1757_v46 = vadd.f32 %v2754_v41, %v3425_v9  ;;  %v1650_v48 = vadd.f32 %v2747_v40, %v3425_v9 }
 0xe1a   :  { %v1752_v61 = vadd.f32 %v1751_v45, %v3419_v6  ;;  %v1645_v50 = vadd.f32 %v1644_v43, %v3419_v6 }
 0xe1b   :  { %v1763_v63 = vsel %vm833_vm5, %v1757_v46, -inf  ;;  %v1656_v22 = vsel %vm833_vm5, %v1650_v48, -inf }
 0xe1c   :  { %v1760_v47 = vsel %vm829_vm4, %v1752_v61, -inf  ;;  %v1653_v49 = vsel %vm829_vm4, %v1645_v50, -inf }
 0xe1d   :  { %1761 = vmax.xlane.f32.xlu0 %v1760_v47 }
 0xe21   :  { %1764 = vmax.xlane.f32.xlu0 %v1763_v63 }
 0xe25   :  { %1654 = vmax.xlane.f32.xlu0 %v1653_v49 }
 0xe29   :  { %1657 = vmax.xlane.f32.xlu0 %v1656_v22 }
 0xeaa   :  { %v1762_v52 = vpop.xlane.xlu0 %1761 }
 0xeab   :  { %v1766_v53 = vsub.f32 %v1752_v61, %v1762_v52 }
 0xead   :  { %v1768_v25 = vmul.f32 1.442695, %v1766_v53 }
 0xeae   :  { %v1765_v55 = vpop.xlane.xlu0 %1764 }
 0xeaf   :  { %3006 = vpow2.f32 %v1768_v25  ;;  %v1767_v56 = vsub.f32 %v1757_v46, %v1765_v55 }
 0xeb1   :  { %v1770_v57 = vmul.f32 1.442695, %v1767_v56  ;;  %v2968_v56 = vld [vmem:[%s3745_s14 + $0x10] sm:$0xff]  }
 0xeb2   :  { %v1655_v58 = vpop.xlane.xlu0 %1654 }
 0xeb3   :  { %3008 = vpow2.f32 %v1770_v57  ;;  %v1659_v6 = vsub.f32 %v1645_v50, %v1655_v58  ;;  %v2969_v57 = vld [vmem:[%s3745_s14 + $0x18] sm:$0xff]  }
 0xeb5   :  { %v1661_v9 = vmul.f32 1.442695, %v1659_v6 }
 0xeb6   :  { %v1658_v59 = vpop.xlane.xlu0 %1657 }
 0xeb7   :  { %v1660_v51 = vsub.f32 %v1650_v48, %v1658_v59 }
 0xeb9   :  { %v3007_v60 = vpop.eup %3006  ;;  %v1663_v62 = vmul.f32 1.442695, %v1660_v51 }
 0xeba   :  { %v1772_v0 = vsel %vm829_vm4, %v3007_v60, 0.0 }
 0xebb   :  { %3010 = vpow2.f32 %v1663_v62  ;;  %1773 = vadd.xlane.f32.xlu1 %v1772_v0 }
 0xebc   :  { %3012 = vpow2.f32 %v1661_v9 }
 0xebd   :  { %v3009_v1 = vpop.eup %3008 }
 0xebe   :  { %v1775_v2 = vsel %vm833_vm5, %v3009_v1, 0.0 }
 0xebf   :  { %1776 = vadd.xlane.f32.xlu0 %v1775_v2 }
 0xec5   :  { %v3011_v3 = vpop.eup %3010 }
 0xec6   :  { %v1668_v4 = vsel %vm833_vm5, %v3011_v3, 0.0  ;;  %v3013_v5 = vpop.eup %3012 }
 0xec7   :  { %1669 = vadd.xlane.f32.xlu0 %v1668_v4  ;;  %v1665_v7 = vsel %vm829_vm4, %v3013_v5, 0.0 }
 0xecb   :  { %1666 = vadd.xlane.f32.xlu0 %v1665_v7 }
 0xecc   :  { %2893 = vrot.lane.b32.xlu1 %v2892_v33, %s3059_s23 }
 0xee1   :  { %2888 = vrot.lane.b32.xlu0 %v2887_v34, %s3059_s23  ;;  %v2967_v34 = vld [vmem:[%s3741_s10 + $0x18] sm:$0xff]   ;;  %s3062_s23 = smov [#allocation2]  }
 0xee2   :  { %2772 = vmatpush3.bf16.msra.mxu0 %v2967_v34  ;;  %s2371_s26 = sshll.u32 %s3062_s23, 4  ;;  %s2372_s26 = int_to_ptr.vmem [resolvable:$true] %s2371_s26 }
 0xee3   :  { %2785 = vmatprep.subr.bf16.mxu0 %v3056_v29  ;;  %s3032_s10 = scalar_lea.vmem %s2372_s26, 32  ;;  %p3037_p1 = scmp.lt.s32.totalorder %s2372_s26, %s2372_s26 }
 0xee4   :  { %p3033_p0 = scmp.ne.s32.totalorder %s2372_s26, %s3032_s10  ;;  %p3038_p2 = scmp.lt.s32.totalorder %s3032_s10, %s3032_s10 }
 0xee6   :  { %p3039_p3 = por %p3038_p2, %p3037_p1 }
 0xee8   :  { %p3040_p4 = pnand %p3039_p3, %p3033_p0 }
 0xf48   :  { %v1774_v10 = vpop.xlane.xlu1 %1773 }
 0xf49   :  { %3014 = vrcp.f32 %v1774_v10 }
 0xf4c   :  { %v1777_v11 = vpop.xlane.xlu0 %1776  ;;  %v2894_v18 = vpop.permute.xlu1 %2893 }
 0xf4d   :  { %3016 = vrcp.f32 %v1777_v11  ;;  %v2896_v20 = vunpack.i.h.bf16 %v2894_v18  ;;  %v2895_v21 = vunpack.i.l.bf16 %v2894_v18  ;;  %v2517_v18 = vld [vmem:[%s3746_s15 + $0x1] ss:$0 sm:$0xff] }
 0xf4f   :  { %v2846_v28 = vpack.c.bf16 %v2896_v20, %v2895_v21 }
 0xf53   :  { %v3015_v12 = vpop.eup %3014 }
 0xf54   :  { %v1670_v14 = vpop.xlane.xlu0 %1669  ;;  %v1780_v16 = vmul.f32 %v3015_v12, %v3007_v60  ;;  %v2970_v12 = vld [vmem:[%s3747_s16 + $0x20] sm:$0xff]  }
 0xf56   :  { %2759 = vmatprep.mubr.msk.f32.mxu1 %vm829_vm4, %v1780_v16  ;;  %v2972_v16 = vld [vmem:[%s3747_s16 + $0x30] sm:$0xff]  }
 0xf57   :  { %v3017_v27 = vpop.eup %3016 }
 0xf58   :  { %v1667_v17 = vpop.xlane.xlu0 %1666  ;;  %v1781_v31 = vmul.f32 %v3017_v27, %v3009_v1  ;;  %v2510_v1 = vld [vmem:[%s3743_s12 + $0x1] ss:$0 sm:$0xff] }
 0xf59   :  { %3018 = vrcp.f32 %v1667_v17  ;;  %v2973_v17 = vld [vmem:[%s3747_s16 + $0x38] sm:$0xff]  }
 0xf5a   :  { %3020 = vrcp.f32 %v1670_v14  ;;  %v2971_v14 = vld [vmem:[%s3747_s16 + $0x28] sm:$0xff]  }
 0xf5c   :  { %v2889_v19 = vpop.permute.xlu0 %2888 }
 0xf5d   :  { %v2891_v23 = vunpack.i.h.bf16 %v2889_v19  ;;  %v2890_v24 = vunpack.i.l.bf16 %v2889_v19 }
 0xf5f   :  { %v2840_v26 = vpack.c.bf16 %v2891_v23, %v2890_v24 }
 0xf61   :  { %2842 = vmatprep.subr.msk.bf16.mxu1 %vm3454_vm8, %v2840_v26 }
 0xf62   :  { %2845 = vmatpush3.bf16.msk.msra.mxu1 %vm3454_vm8, %v2840_v26 }
 0xf63   :  { %v3019_v30 = vpop.eup %3018  ;;  %2848 = vmatprep.subr.msk.bf16.mxu1 %vm3454_vm8, %v2846_v28 }
 0xf64   :  { %v1673_v32 = vmul.f32 %v3019_v30, %v3013_v5  ;;  %v3021_v13 = vpop.eup %3020  ;;  %v2511_v5 = vld [vmem:[%s3744_s13 + $0x1] ss:$0 sm:$0xff] }
 0xf65   :  { %2760 = vmatmul.mubr.msk.f32.vlgmr.msra.gmra.mrb[28].mxu1 %vm829_vm4, %v1781_v31  ;;  %v1674_v33 = vmul.f32 %v3021_v13, %v3011_v3 }
 0xf66   :  { %2851 = vmatpush3.bf16.msk.msra.mxu1 %vm3454_vm8, %v2846_v28  ;;  %2766 = vmatprep.mubr.msk.f32.mxu1 %vm829_vm4, %v1673_v32 }
 0xf67   :  { %2777 = vmatprep.subr.bf16.mxu1 %v3056_v29 }
 0xf6d   :  { %2767 = vmatmul.mubr.msk.f32.vlgmr.msra.gmra.mrb[28].mxu1 %vm829_vm4, %v1674_v33 }
 0xf6e   :  { %2781 = vmatprep.mubr.msk.bf16.mxu1 %vm3057_vm2, %v3056_v29  ;;  %2778 = vmatpush3.bf16.msra.mxu1 %v2968_v56 }
 0xf6f   :  { %2779 = vmatprep.subr.bf16.mxu1 %v3056_v29 }
 0xf72   :  { %2780 = vmatpush3.bf16.msra.mxu1 %v2969_v57 }
0x1040   :  { %v2768_v15 = vpop.f32.mrb[28].mxu1 }
0x1041   :  { %v1955_v35 = vpop.f32.mrb[29].mxu1 }
0x1042   :  { %v1964_v36 = vpack.c.bf16 %v2768_v15, %v1955_v35 }
0x1044   :  { %2774 = vmatmul.mubr.msk.bf16.vlgmr.msra.gmra.mrb[16].mxu0 %vm616_vm0, %v1964_v36 }
0x1045   :  { %2793 = vmatprep.mubr.msk.bf16.mxu0 %vm3057_vm2, %v3056_v29  ;;  %2786 = vmatpush3.bf16.msra.mxu0 %v2970_v12 }
0x1046   :  { %2787 = vmatprep.subr.bf16.mxu0 %v3056_v29 }
0x1049   :  { %2788 = vmatpush3.bf16.msra.mxu0 %v2971_v14 }
0x104a   :  { %2789 = vmatprep.subr.bf16.mxu0 %v3056_v29 }
0x104d   :  { %2790 = vmatpush3.bf16.msra.mxu0 %v2972_v16 }
0x104e   :  { %2791 = vmatprep.subr.bf16.mxu0 %v3056_v29 }
0x1051   :  { %2792 = vmatpush3.bf16.msra.mxu0 %v2973_v17 }
0x1117   :  { %v2027_v37 = vpop.f32.mrb[16].mxu0 }
0x1118   :  { %v2028_v44 = vadd.f32 %v2504_v38, %v2027_v37  ;;  %v2775_v40 = vpop.f32.mrb[17].mxu0 }
0x1119   :  { %v2030_v41 = vpop.f32.mrb[18].mxu0 }
0x111a   :  { %v3651_v43 = vadd.f32 %v2028_v44, %v3541_v39  ;;  %v2031_v45 = vadd.f32 %v2504_v38, %v2030_v41  ;;  %v2776_v61 = vpop.f32.mrb[19].mxu0 }
0x111c   :  { %v3654_v46 = vadd.f32 %v2031_v45, %v3544_v42  ;;  %v2040_v47 = vsel %vm616_vm0, %v3651_v43, 0.0 }
0x111d   :  { %2041 = vadd.xlane.f32.xlu0 %v2040_v47  ;;  %v3061_v47 = vmov 0.0|0.0  }
0x111e   :  { %v2043_v50 = vsel %vm620_vm1, %v3654_v46, 0.0  ;;  %2852 = vmatprep.subr.bf16.mxu1 %v3061_v47 }
0x111f   :  { %2044 = vadd.xlane.f32.xlu1 %v2043_v50  ;;  %v2530_v50 = vld [vmem:[%s3748_s17 + $0x1] ss:$0 sm:$0xff] }
0x11aa   :  { %v2042_v63 = vpop.xlane.xlu0 %2041 }
0x11ab   :  { %v2046_v48 = vmul.f32 0.03125, %v2042_v63 }
0x11ac   :  { %v2045_v49 = vpop.xlane.xlu1 %2044 }
0x11ad   :  { %v2048_v22 = vsub.f32 %v3651_v43, %v2046_v48  ;;  %v2047_v39 = vmul.f32 0.03125, %v2045_v49 }
0x11af   :  { %v2049_v52 = vsub.f32 %v3654_v46, %v2047_v39  ;;  %v2050_v53 = vmul.f32 %v2048_v22, %v2048_v22 }
0x11b1   :  { %v2052_v42 = vsel %vm616_vm0, %v2050_v53, 0.0  ;;  %v2051_v25 = vmul.f32 %v2049_v52, %v2049_v52 }
0x11b2   :  { %2053 = vadd.xlane.f32.xlu0 %v2052_v42 }
0x11b3   :  { %v2055_v55 = vsel %vm620_vm1, %v2051_v25, 0.0 }
0x11b6   :  { %2056 = vadd.xlane.f32.xlu0 %v2055_v55  ;;  %v2258_v55 = vld [vmem:[%s3736_s5] sm:$0x3] }
0x123f   :  { %v2054_v58 = vpop.xlane.xlu0 %2053 }
0x1240   :  { %v2058_v6 = vmul.f32 0.03125, %v2054_v58 }
0x1242   :  { %v2060_v59 = vadd.f32 1e-12, %v2058_v6 }
0x1243   :  { %v2057_v51 = vpop.xlane.xlu0 %2056 }
0x1244   :  { %3022 = vrsqrt.f32 %v2060_v59  ;;  %v2059_v60 = vmul.f32 0.03125, %v2057_v51 }
0x1246   :  { %v2061_v9 = vadd.f32 1e-12, %v2059_v60 }
0x1248   :  { %3024 = vrsqrt.f32 %v2061_v9 }
0x124e   :  { %v3023_v62 = vpop.eup %3022 }
0x124f   :  { %v2064_v0 = vmul.f32 %v3023_v62, %v2048_v22 }
0x1251   :  { %v2072_v3 = vmul.f32 %v2510_v1, %v2064_v0  ;;  %v2538_v0 = vld [vmem:[%s3749_s18] ss:$0 sm:$0xff] }
0x1252   :  { %v3025_v2 = vpop.eup %3024 }
0x1253   :  { %v2065_v4 = vmul.f32 %v3025_v2, %v2049_v52  ;;  %v2080_v8 = vadd.f32 %v2511_v5, %v2072_v3  ;;  %v2539_v2 = vld [vmem:[%s3750_s19] ss:$0 sm:$0xff] }
0x1255   :  { %v2073_v7 = vmul.f32 %v2510_v1, %v2065_v4 }
0x1257   :  { %v2081_v10 = vadd.f32 %v2511_v5, %v2073_v7 }
0x1259   :  { %v2082_v11 = vpack.c.bf16 %v2081_v10, %v2080_v8 }
0x125b   :  { %2782 = vmatmul.mubr.msk.bf16.vlgmr.msra.gmra.mrb[32].mxu1 %vm616_vm0, %v2082_v11 }
0x125c   :  { %2801 = vmatprep.mubr.msk.f32.mxu1 %vm3057_vm2, %v3056_v29 }
0x132e   :  { %v2145_v19 = vpop.f32.mrb[32].mxu1 }
0x132f   :  { %v2146_v20 = vadd.f32 %v2517_v18, %v2145_v19  ;;  %v2783_v21 = vpop.f32.mrb[33].mxu1 }
0x1330   :  { %v2148_v23 = vpop.f32.mrb[34].mxu1 }
0x1331   :  { %v2152_v24 = vmul.f32 %v2146_v20, %v2146_v20  ;;  %v2149_v26 = vadd.f32 %v2517_v18, %v2148_v23  ;;  %v2784_v27 = vpop.f32.mrb[35].mxu1 }
0x1333   :  { %v2154_v28 = vmul.f32 %v2152_v24, %v2146_v20  ;;  %v2153_v30 = vmul.f32 %v2149_v26, %v2149_v26 }
0x1335   :  { %v2156_v31 = vmul.f32 0.044715, %v2154_v28  ;;  %v2155_v29 = vmul.f32 %v2153_v30, %v2149_v26 }
0x1337   :  { %v2158_v32 = vadd.f32 %v2156_v31, %v2146_v20  ;;  %v2157_v13 = vmul.f32 0.044715, %v2155_v29 }
0x1339   :  { %v2160_v33 = vmul.f32 0.7978846, %v2158_v32  ;;  %v2159_v34 = vadd.f32 %v2157_v13, %v2149_v26 }
0x133b   :  { %3026 = vtanh.f32 %v2160_v33  ;;  %v2161_v15 = vmul.f32 0.7978846, %v2159_v34 }
0x133d   :  { %3028 = vtanh.f32 %v2161_v15 }
0x1345   :  { %v3027_v35 = vpop.eup %3026 }
0x1346   :  { %v2164_v36 = vadd.f32 1.0, %v3027_v35 }
0x1347   :  { %v3029_v38 = vpop.eup %3028 }
0x1348   :  { %v2166_v37 = vmul.f32 0.5, %v2164_v36  ;;  %v2165_v44 = vadd.f32 1.0, %v3029_v38 }
0x134a   :  { %v2167_v40 = vmul.f32 0.5, %v2165_v44  ;;  %v2168_v41 = vmul.f32 %v2166_v37, %v2146_v20 }
0x134c   :  { %v2169_v45 = vmul.f32 %v2167_v40, %v2149_v26 }
0x134e   :  { %v2170_v61 = vpack.c.bf16 %v2169_v45, %v2168_v41 }
0x1350   :  { %2794 = vmatmul.mubr.msk.bf16.vlgmr.msra.gmra.mrb[20].mxu0 %vm1397_vm9, %v2170_v61 }
0x1423   :  { %v2249_v63 = vpop.f32.mrb[20].mxu0 }
0x1424   :  { %v2250_v48 = vadd.f32 %v2530_v50, %v2249_v63  ;;  %v2795_v49 = vpop.f32.mrb[21].mxu0 }
0x1425   :  { %v2252_v22 = vpop.f32.mrb[22].mxu0 }
0x1426   :  { %v2253_v39 = vadd.f32 %v2530_v50, %v2252_v22  ;;  %v2796_v52 = vpop.f32.mrb[23].mxu0  ;;  %v2256_v53 = vadd.f32 %v2250_v48, %v3651_v43 }
0x1428   :  { %v2257_v42 = vadd.f32 %v2253_v39, %v3654_v46 }
0x142a   :  { %v2853_v25 = vpack.c.bf16 %v2257_v42, %v2256_v53 }
0x142c   :  { %2855 = vmatpush3.bf16.msk.msra.mxu1 %vm3454_vm8, %v2853_v25 }
0x142f   :  { %2802 = vmatmul.mubr.msk.f32.vlgmr.msra.gmra.mrb[30].mxu1 %vm829_vm4, %v2258_v55 }
0x1502   :  { %v2331_v56 = vpop.f32.mrb[30].mxu1 }
0x1503   :  { %v2337_v57 = vsel %vm620_vm1, %v2331_v56, 0.0  ;;  %v2803_v58 = vpop.f32.mrb[31].mxu1 }
0x1504   :  { %2338 = vadd.xlane.f32.xlu0 %v2337_v57 }
0x1591   :  { %v2339_v6 = vpop.xlane.xlu0 %2338 }
0x1592   :  { %v2340_v59 = vmul.f32 0.03125, %v2339_v6 }
0x1594   :  { %v2341_v43 = vsub.f32 %v2331_v56, %v2340_v59 }
0x1596   :  { %v2342_v51 = vmul.f32 %v2341_v43, %v2341_v43 }
0x1598   :  { %v2343_v46 = vsel %vm620_vm1, %v2342_v51, 0.0 }
0x1599   :  { %2344 = vadd.xlane.f32.xlu0 %v2343_v46 }
0x1626   :  { %v2345_v54 = vpop.xlane.xlu0 %2344 }
0x1627   :  { %v2346_v60 = vmul.f32 0.03125, %v2345_v54 }
0x1629   :  { %v2347_v9 = vadd.f32 1e-12, %v2346_v60 }
0x162b   :  { %3030 = vrsqrt.f32 %v2347_v9 }
0x1635   :  { %v3031_v62 = vpop.eup %3030 }
0x1636   :  { %v2349_v1 = vmul.f32 %v3031_v62, %v2341_v43 }
0x1638   :  { %v2356_v3 = vmul.f32 %v2538_v0, %v2349_v1 }
0x163a   :  { %v2363_v4 = vadd.f32 %v2539_v2, %v2356_v3 }
0x163c   :  { %2364 = vst.msk [vmem:[#allocation2] sm:$0x3] %vm620_vm1, %v2363_v4 }
0x163d   :  { %3043 = shalt.err (!%p3040_p4)
}
0x163e   :  { %s3044_s27 = scalar_lea.hbm %s3751_s20, 32 }
0x163f   :  { %p3045_p5 = scmp.ne.s32.totalorder %s3751_s20, %s3044_s27  ;;  %p3048_p6 = scmp.lt.u32.totalorder %s3044_s27, %s3751_s20 }
0x1641   :  { %p3050_p7 = pnand %p3048_p6, %p3045_p5 }
0x1643   :  { %3053 = shalt.err (!%p3050_p7)
}
0x1644   :  { %2374 = dma.vmem_to_hbm [thread:$0]  %s2372_s26, 32, %s3751_s20, [#allocation3]  }
0x1645   :  { %3054 = dma.done.wait [#allocation3], 32  }
0x1646   :  { %3055 = vsyncadd [#allocation3], 4294967264 }
0x1647   :  { %2378 = vsyncpa [#allocation3], 1 }

</bundles_post_ra>
